<compile_context>
chip_gen: v7x
topology: tpu7x:2x2x1
jax: 0.10.0
libtpu: 0.0.40
codegen_flags: <defaults>
</compile_context>

<pallas_src>
import functools

import numpy as np
import jax
import jax.numpy as jnp
from jax import lax
from jax.experimental import pallas as pl
from jax.experimental.pallas import tpu as pltpu

HEADING_STATES = 1        # args.heading_states (C)
MAP_DEPTH = 4             # args.map_depth
KSIZE = 3                 # args.motion_kernel_size
HIDDEN = 32               # args.motion_hidden_size
DOWNSAMPLE = 2            # args.belief_downsample_factor
ACTION_EMB = 8            # action_embedding_size
KK = KSIZE * KSIZE        # kernel_params


def _tensorcores_per_chip():
    """Best-effort TensorCores-per-chip; falls back to 1 (single-step grid, always correct)."""
    try:
        kind = jax.devices()[0].device_kind.lower().replace(" ", "")
    except Exception:
        return 1
    if any(t in kind for t in ("v5lite", "v5e", "v6lite", "v6e")):
        return 1                      # one TC per chip -> collapse grid to a single step
    if any(t in kind for t in ("7x", "v7", "v5p", "v4")):
        return 2                      # megacore: keep two 'parallel' grid steps
    return 1


def _choose_nb(N):
    """Batch elements per grid step so that grid length == #TensorCores (when divisible)."""
    steps = max(1, min(_tensorcores_per_chip(), N))
    while N % steps:
        steps -= 1
    return N // steps


def _tap_shifts(K, W, L):
    """Flat-lane roll amount per tap (mod full lane length so multi-batch blocks work)."""
    pad = K // 2
    return [(((ki - pad) * W + (kj - pad)) % L) for ki in range(K) for kj in range(K)]


def _make_premasks(K, H, W, nb):
    """Additive 0/-inf boundary masks, PRE-ROLLED to source coordinates.

    mask[t] at *target* lane l (pixel = l % HW) is valid iff the 2D source
    (y - dy, x - dx) lies inside the map; this also nulls the lane-wrap across
    batch boundaries introduced by the flat roll.  premask[t] = roll(mask[t], -shift[t])
    so the kernel can add it BEFORE rolling and skip the post-roll add.
    """
    HW = H * W
    L = nb * HW
    pad = K // 2
    lane = np.arange(L)
    pix = lane % HW
    yi = pix // W
    xi = pix % W
    shifts = _tap_shifts(K, W, L)
    premasks = np.zeros((K * K, L), np.float32)
    for ki in range(K):
        for kj in range(K):
            t = ki * K + kj
            dy, dx = ki - pad, kj - pad
            valid = (yi - dy >= 0) & (yi - dy < H) & (xi - dx >= 0) & (xi - dx < W)
            mask_t = np.where(valid, 0.0, -np.inf).astype(np.float32)
            premasks[t] = np.roll(mask_t, -shifts[t])
    return premasks


def _make_kernel(K, H, W, nb):
    HW = H * W
    L = nb * HW
    shifts = _tap_shifts(K, W, L)
    nk = K * K

    def kernel(sm_ref, bel_ref, bias_ref, premask_ref,
               w1_ref, b1_ref, wb_ref, wc_ref, out_ref, st_ref):
        dot = functools.partial(jnp.dot, preferred_element_type=jnp.float32)

        x = sm_ref[...]                                            # (D, L) pooled semantic map

        # ---- map_conv (Bottleneck surrogate) fused with conv1x1:
        #   m = wc@(x + w2@relu(w1@x+b1) + b2) + bc + action
        #     = wc@x + (wc@w2)@h + (bc + wc@b2 + action)   with Wb, bias precomputed. ----
        h = jnp.maximum(dot(w1_ref[...], x) + b1_ref[...], 0.0)    # (HID, L)
        m = dot(wc_ref[...], x) + dot(wb_ref[...], h) + bias_ref[...]   # (KK, L)

        # ---- single fused log-softmax over the K*K taps
        # (log_softmax(log_softmax(m)+log_softmax(a)) == log_softmax(m + a)). ----
        m_max = jnp.max(m, axis=0, keepdims=True)
        lk = m - (m_max + jnp.log(jnp.sum(jnp.exp(m - m_max), axis=0, keepdims=True)))

        # ---- propagate_belief: each source cell scatters its log-mass onto its KxK
        #      neighbourhood; targets accumulate with logsumexp (== scatter_logsumexp).
        #      Hoisted adds (S0 computed once), one XLU roll per tap staged densely in
        #      a (KK, L) VMEM scratch, then a single-pass logsumexp over taps. ----
        s0 = lk + bel_ref[...] + premask_ref[...]                  # (KK, L)
        for t in range(nk):
            row = s0[t:t + 1, :]
            st_ref[t:t + 1, :] = (
                pltpu.roll(row, shift=shifts[t], axis=1) if shifts[t] else row)

        st = st_ref[...]                                           # (KK, L)
        mx = jnp.max(st, axis=0, keepdims=True)
        # center tap (dy=dx=0) is always valid, so mx is finite for finite beliefs.
        out_ref[...] = mx + jnp.log(jnp.sum(jnp.exp(st - mx), axis=0, keepdims=True))

    return kernel


def motion_model_forward(log_belief, semantic_map, action, params, *, nb=None):
    """log_belief (N,1,H,W), semantic_map (N,D,s*H,s*W), action (N,A) -> (N,1,H,W)."""
    N, _, H, W = log_belief.shape
    D = semantic_map.shape[1]
    HW = H * W
    s = DOWNSAMPLE

    if nb is None:
        nb = _choose_nb(N)                      # grid length == #TensorCores per chip
    assert N % nb == 0, "batch must be divisible by the per-step batch block"
    L = nb * HW                                 # lanes per grid step
    assert L % 128 == 0, "nb*H*W must be a multiple of 128 for lane-aligned blocks"

    # Glue (cheap XLA ops): Dropout2d is identity at inference; MaxPool2d(s); switch to
    # channel-major, batch-concatenated-on-lanes layout so in-kernel 1x1 convs are matmuls.
    pooled = semantic_map.reshape(N, D, H, s, W, s).max(axis=(3, 5))
    sm_cm = pooled.reshape(N, D, HW).transpose(1, 0, 2).reshape(D, N * HW).astype(jnp.float32)
    bel_cm = log_belief.astype(jnp.float32).reshape(1, N * HW)

    hi = lax.Precision.HIGHEST

    # Action MLP (DenseMlpBlock2 surrogate) hoisted out of the kernel (a few hundred FLOPs).
    act = action.astype(jnp.float32)
    ah = jax.nn.relu(jnp.einsum('na,oa->no', act, params['wa1'], precision=hi)
                     + params['ba1'][:, 0][None])
    ao = jnp.einsum('nh,oh->no', ah, params['wa2'], precision=hi) + params['ba2'][:, 0][None]

    # Fold the Bottleneck's second 1x1 conv into conv1x1:  Wb = wc@w2,  bias += wc@b2.
    Wb = jnp.matmul(params['wc'], params['w2'], precision=hi).astype(jnp.float32)   # (KK, HID)
    bias_col = params['bc'] + jnp.matmul(params['wc'], params['b2'], precision=hi)  # (KK, 1)
    # Per-batch action logits folded into one (KK, N*HW) bias plane.
    bias = (bias_col + jnp.repeat(ao.T, HW, axis=1)).astype(jnp.float32)

    # Pre-rolled boundary masks (constant across grid steps -> DMA'd once).
    premask = jnp.asarray(_make_premasks(KSIZE, H, W, nb))          # (KK, L)

    kernel = _make_kernel(KSIZE, H, W, nb)

    def const_spec(shape):
        nd = len(shape)
        return pl.BlockSpec(shape, lambda n, _nd=nd: (0,) * _nd)

    out = pl.pallas_call(
        kernel,
        out_shape=jax.ShapeDtypeStruct((1, N * HW), jnp.float32),
        grid=(N // nb,),
        in_specs=[
            pl.BlockSpec((D, L), lambda n: (0, n)),      # semantic map block
            pl.BlockSpec((1, L), lambda n: (0, n)),      # log belief block
            pl.BlockSpec((KK, L), lambda n: (0, n)),     # fused bias (bc + wc@b2 + action)
            const_spec((KK, L)),                         # pre-rolled boundary masks
            const_spec(params['w1'].shape), const_spec(params['b1'].shape),
            const_spec(Wb.shape), const_spec(params['wc'].shape),
        ],
        out_specs=pl.BlockSpec((1, L), lambda n: (0, n)),
        scratch_shapes=[pltpu.VMEM((KK, L), jnp.float32)],          # staged shifted taps
        compiler_params=pltpu.CompilerParams(dimension_semantics=("parallel",)),
    )(sm_cm, bel_cm, bias, premask, params['w1'], params['b1'], Wb, params['wc'])

    return out.reshape(N, 1, H, W)


def ref_forward(log_belief, semantic_map, action, p):
    """Pure-JAX reference of the same forward pass (unfused, pad-based shift formulation)."""
    N, _, H, W = log_belief.shape
    D = semantic_map.shape[1]
    s = DOWNSAMPLE
    hi = lax.Precision.HIGHEST

    pooled = semantic_map.reshape(N, D, H, s, W, s).max(axis=(3, 5))
    x = pooled.reshape(N, D, H * W)
    h = jax.nn.relu(jnp.einsum('od,ndp->nop', p['w1'], x, precision=hi) + p['b1'][None])
    y = x + jnp.einsum('oh,nhp->nop', p['w2'], h, precision=hi) + p['b2'][None]
    m = jnp.einsum('od,ndp->nop', p['wc'], y, precision=hi) + p['bc'][None]
    motion_log = jax.nn.log_softmax(m, axis=1)                     # (N, KK, HW)

    ah = jax.nn.relu(jnp.einsum('na,oa->no', action, p['wa1'], precision=hi) + p['ba1'][:, 0][None])
    ao = jnp.einsum('nh,oh->no', ah, p['wa2'], precision=hi) + p['ba2'][:, 0][None]
    lang_log = jax.nn.log_softmax(ao, axis=1)                      # (N, KK)

    lk = motion_log + lang_log[:, :, None]
    lk = lk - jax.nn.logsumexp(lk, axis=1, keepdims=True)
    lk = lk.reshape(N, KK, H, W)

    bel = log_belief[:, 0]
    pad = KSIZE // 2
    src = bel[:, None] + lk                                        # (N, KK, H, W)
    padded = jnp.full((N, KK, H + 2 * pad, W + 2 * pad), -jnp.inf, jnp.float32)
    padded = padded.at[:, :, pad:pad + H, pad:pad + W].set(src)
    shifted = []
    for ki in range(KSIZE):
        for kj in range(KSIZE):
            t = ki * KSIZE + kj
            dy, dx = ki - pad, kj - pad
            shifted.append(padded[:, t, pad - dy:pad - dy + H, pad - dx:pad - dx + W])
    st = jnp.stack(shifted, axis=1)                                # (N, KK, H, W)
    mx = jnp.max(st, axis=1)
    mxs = jnp.where(jnp.isinf(mx), 0.0, mx)
    out = mx + jnp.log(jnp.sum(jnp.exp(st - mxs[:, None]), axis=1))
    return out[:, None]


if __name__ == "__main__":
    N, H, W = 4, 16, 16
    D, A = MAP_DEPTH, ACTION_EMB

    key = jax.random.PRNGKey(0)
    ks = jax.random.split(key, 13)
    params = {
        'w1': 0.3 * jax.random.normal(ks[0], (HIDDEN, D), jnp.float32),
        'b1': 0.1 * jax.random.normal(ks[1], (HIDDEN, 1), jnp.float32),
        'w2': 0.2 * jax.random.normal(ks[2], (D, HIDDEN), jnp.float32),
        'b2': 0.1 * jax.random.normal(ks[3], (D, 1), jnp.float32),
        'wc': 0.3 * jax.random.normal(ks[4], (KK, D), jnp.float32),
        'bc': 0.1 * jax.random.normal(ks[5], (KK, 1), jnp.float32),
        'wa1': 0.3 * jax.random.normal(ks[6], (HIDDEN, A), jnp.float32),
        'ba1': 0.1 * jax.random.normal(ks[7], (HIDDEN, 1), jnp.float32),
        'wa2': 0.2 * jax.random.normal(ks[8], (KK, HIDDEN), jnp.float32),
        'ba2': 0.1 * jax.random.normal(ks[9], (KK, 1), jnp.float32),
    }

    log_belief = jax.nn.log_softmax(
        jax.random.normal(ks[10], (N, H * W), jnp.float32), axis=-1).reshape(N, 1, H, W)
    semantic_map = jax.random.normal(ks[11], (N, D, DOWNSAMPLE * H, DOWNSAMPLE * W), jnp.float32)
    action = jax.random.normal(ks[12], (N, A), jnp.float32)

    out = motion_model_forward(log_belief, semantic_map, action, params)   # nb auto-chosen
    out = jax.block_until_ready(out)

    ref = jax.block_until_ready(ref_forward(log_belief, semantic_map, action, params))
    assert out.shape == (N, 1, H, W)
    assert bool(jnp.all(jnp.isfinite(out)))
    # tolerance loosened: kernel uses default MXU precision, reference uses HIGHEST
    np.testing.assert_allclose(np.asarray(out), np.asarray(ref), rtol=5e-2, atol=5e-2)

    print("KERNEL_OK")
</pallas_src>

<mosaic_0001>
module attributes {stable_mosaic.version = 11 : i64} {
  func.func @kernel(%arg0: i32, %arg1: memref<4x1024xf32, #tpu.memory_space<vmem>>, %arg2: memref<1x1024xf32, #tpu.memory_space<vmem>>, %arg3: memref<9x1024xf32, #tpu.memory_space<vmem>>, %arg4: memref<9x1024xf32, #tpu.memory_space<vmem>>, %arg5: memref<32x4xf32, #tpu.memory_space<vmem>>, %arg6: memref<32x1xf32, #tpu.memory_space<vmem>>, %arg7: memref<9x32xf32, #tpu.memory_space<vmem>>, %arg8: memref<9x4xf32, #tpu.memory_space<vmem>>, %arg9: memref<1x1024xf32, #tpu.memory_space<vmem>>, %arg10: memref<9x1024xf32, #tpu.memory_space<vmem>>) attributes {dimension_semantics = [#tpu.dimension_semantics<parallel>], iteration_bounds = array<i64: 1>, scalar_prefetch = 0 : i64, scratch_operands = 1 : i64, tpu.core_type = #tpu.core_type<tc>, window_params = [{transform_indices = @transform_0, window_bounds = array<i64: 4, 1024>}, {transform_indices = @transform_1, window_bounds = array<i64: 1, 1024>}, {transform_indices = @transform_2, window_bounds = array<i64: 9, 1024>}, {pipeline_mode = #tpu.pipeline_mode<synchronous>, transform_indices = @transform_3, window_bounds = array<i64: 9, 1024>}, {pipeline_mode = #tpu.pipeline_mode<synchronous>, transform_indices = @transform_4, window_bounds = array<i64: 32, 4>}, {pipeline_mode = #tpu.pipeline_mode<synchronous>, transform_indices = @transform_5, window_bounds = array<i64: 32, 1>}, {pipeline_mode = #tpu.pipeline_mode<synchronous>, transform_indices = @transform_6, window_bounds = array<i64: 9, 32>}, {pipeline_mode = #tpu.pipeline_mode<synchronous>, transform_indices = @transform_7, window_bounds = array<i64: 9, 4>}, {transform_indices = @transform_8, window_bounds = array<i64: 1, 1024>}]} {
    %c0 = arith.constant 0 : index
    %c0_0 = arith.constant 0 : index
    %0 = vector.load %arg1[%c0, %c0_0] : memref<4x1024xf32, #tpu.memory_space<vmem>>, vector<4x1024xf32>
    %c0_1 = arith.constant 0 : index
    %c0_2 = arith.constant 0 : index
    %1 = vector.load %arg5[%c0_1, %c0_2] : memref<32x4xf32, #tpu.memory_space<vmem>>, vector<32x4xf32>
    %cst = arith.constant dense<0.000000e+00> : vector<32x1024xf32>
    %2 = tpu.matmul %1, %0, %cst {dimension_numbers = #tpu.dot_dimension_numbers<[1], [0], [0], [1], [0, 0, 1, 1], [], []>} : vector<32x4xf32>, vector<4x1024xf32>, vector<32x1024xf32> -> vector<32x1024xf32>
    %c0_3 = arith.constant 0 : index
    %c0_4 = arith.constant 0 : index
    %3 = vector.load %arg6[%c0_3, %c0_4] : memref<32x1xf32, #tpu.memory_space<vmem>>, vector<32x1xf32>
    %4 = vector.broadcast %3 : vector<32x1xf32> to vector<32x1024xf32>
    %5 = arith.addf %2, %4 : vector<32x1024xf32>
    %cst_5 = arith.constant 0.000000e+00 : f32
    %6 = vector.broadcast %cst_5 : f32 to vector<32x1024xf32>
    %7 = arith.maximumf %5, %6 : vector<32x1024xf32>
    %c0_6 = arith.constant 0 : index
    %c0_7 = arith.constant 0 : index
    %8 = vector.load %arg8[%c0_6, %c0_7] : memref<9x4xf32, #tpu.memory_space<vmem>>, vector<9x4xf32>
    %cst_8 = arith.constant dense<0.000000e+00> : vector<9x1024xf32>
    %9 = tpu.matmul %8, %0, %cst_8 {dimension_numbers = #tpu.dot_dimension_numbers<[1], [0], [0], [1], [0, 0, 1, 1], [], []>} : vector<9x4xf32>, vector<4x1024xf32>, vector<9x1024xf32> -> vector<9x1024xf32>
    %c0_9 = arith.constant 0 : index
    %c0_10 = arith.constant 0 : index
    %10 = vector.load %arg7[%c0_9, %c0_10] : memref<9x32xf32, #tpu.memory_space<vmem>>, vector<9x32xf32>
    %cst_11 = arith.constant dense<0.000000e+00> : vector<9x1024xf32>
    %11 = tpu.matmul %10, %7, %cst_11 {dimension_numbers = #tpu.dot_dimension_numbers<[1], [0], [0], [1], [0, 0, 1, 1], [], []>} : vector<9x32xf32>, vector<32x1024xf32>, vector<9x1024xf32> -> vector<9x1024xf32>
    %12 = arith.addf %9, %11 : vector<9x1024xf32>
    %c0_12 = arith.constant 0 : index
    %c0_13 = arith.constant 0 : index
    %13 = vector.load %arg3[%c0_12, %c0_13] : memref<9x1024xf32, #tpu.memory_space<vmem>>, vector<9x1024xf32>
    %14 = arith.addf %12, %13 : vector<9x1024xf32>
    %cst_14 = arith.constant dense<0xFF800000> : vector<1024xf32>
    %15 = vector.multi_reduction <maximumf>, %14, %cst_14 [0] : vector<9x1024xf32> to vector<1024xf32>
    %16 = vector.shape_cast %15 : vector<1024xf32> to vector<1x1024xf32>
    %17 = vector.broadcast %16 : vector<1x1024xf32> to vector<9x1024xf32>
    %18 = arith.subf %14, %17 : vector<9x1024xf32>
    %19 = math.exp %18 : vector<9x1024xf32>
    %cst_15 = arith.constant dense<0.000000e+00> : vector<1024xf32>
    %20 = vector.multi_reduction <add>, %19, %cst_15 [0] : vector<9x1024xf32> to vector<1024xf32>
    %21 = vector.shape_cast %20 : vector<1024xf32> to vector<1x1024xf32>
    %22 = math.log %21 : vector<1x1024xf32>
    %23 = arith.addf %16, %22 : vector<1x1024xf32>
    %24 = vector.broadcast %23 : vector<1x1024xf32> to vector<9x1024xf32>
    %25 = arith.subf %14, %24 : vector<9x1024xf32>
    %c0_16 = arith.constant 0 : index
    %c0_17 = arith.constant 0 : index
    %26 = vector.load %arg2[%c0_16, %c0_17] : memref<1x1024xf32, #tpu.memory_space<vmem>>, vector<1x1024xf32>
    %27 = vector.broadcast %26 : vector<1x1024xf32> to vector<9x1024xf32>
    %28 = arith.addf %25, %27 : vector<9x1024xf32>
    %c0_18 = arith.constant 0 : index
    %c0_19 = arith.constant 0 : index
    %29 = vector.load %arg4[%c0_18, %c0_19] : memref<9x1024xf32, #tpu.memory_space<vmem>>, vector<9x1024xf32>
    %30 = arith.addf %28, %29 : vector<9x1024xf32>
    %31 = vector.extract_strided_slice %30 {offsets = [0, 0], sizes = [1, 1024], strides = [1, 1]} : vector<9x1024xf32> to vector<1x1024xf32>
    %c1007_i32 = arith.constant 1007 : i32
    %32 = tpu.dynamic_rotate %31 by %c1007_i32 dim 1 : vector<1x1024xf32>, i32 -> vector<1x1024xf32>
    %c0_20 = arith.constant 0 : index
    %c0_21 = arith.constant 0 : index
    %33 = vector.load %arg10[%c0_20, %c0_21] : memref<9x1024xf32, #tpu.memory_space<vmem>>, vector<1x1024xf32>
    tpu.vector_store %arg10[%c0_20, %c0_21], %32 {strides = array<i32>} : memref<9x1024xf32, #tpu.memory_space<vmem>>, vector<1x1024xf32>,
    %34 = vector.extract_strided_slice %30 {offsets = [1, 0], sizes = [1, 1024], strides = [1, 1]} : vector<9x1024xf32> to vector<1x1024xf32>
    %c1008_i32 = arith.constant 1008 : i32
    %35 = tpu.dynamic_rotate %34 by %c1008_i32 dim 1 : vector<1x1024xf32>, i32 -> vector<1x1024xf32>
    %c1 = arith.constant 1 : index
    %c0_22 = arith.constant 0 : index
    %36 = vector.load %arg10[%c1, %c0_22] : memref<9x1024xf32, #tpu.memory_space<vmem>>, vector<1x1024xf32>
    tpu.vector_store %arg10[%c1, %c0_22], %35 {strides = array<i32>} : memref<9x1024xf32, #tpu.memory_space<vmem>>, vector<1x1024xf32>,
    %37 = vector.extract_strided_slice %30 {offsets = [2, 0], sizes = [1, 1024], strides = [1, 1]} : vector<9x1024xf32> to vector<1x1024xf32>
    %c1009_i32 = arith.constant 1009 : i32
    %38 = tpu.dynamic_rotate %37 by %c1009_i32 dim 1 : vector<1x1024xf32>, i32 -> vector<1x1024xf32>
    %c2 = arith.constant 2 : index
    %c0_23 = arith.constant 0 : index
    %39 = vector.load %arg10[%c2, %c0_23] : memref<9x1024xf32, #tpu.memory_space<vmem>>, vector<1x1024xf32>
    tpu.vector_store %arg10[%c2, %c0_23], %38 {strides = array<i32>} : memref<9x1024xf32, #tpu.memory_space<vmem>>, vector<1x1024xf32>,
    %40 = vector.extract_strided_slice %30 {offsets = [3, 0], sizes = [1, 1024], strides = [1, 1]} : vector<9x1024xf32> to vector<1x1024xf32>
    %c1023_i32 = arith.constant 1023 : i32
    %41 = tpu.dynamic_rotate %40 by %c1023_i32 dim 1 : vector<1x1024xf32>, i32 -> vector<1x1024xf32>
    %c3 = arith.constant 3 : index
    %c0_24 = arith.constant 0 : index
    %42 = vector.load %arg10[%c3, %c0_24] : memref<9x1024xf32, #tpu.memory_space<vmem>>, vector<1x1024xf32>
    tpu.vector_store %arg10[%c3, %c0_24], %41 {strides = array<i32>} : memref<9x1024xf32, #tpu.memory_space<vmem>>, vector<1x1024xf32>,
    %43 = vector.extract_strided_slice %30 {offsets = [4, 0], sizes = [1, 1024], strides = [1, 1]} : vector<9x1024xf32> to vector<1x1024xf32>
    %c4 = arith.constant 4 : index
    %c0_25 = arith.constant 0 : index
    %44 = vector.load %arg10[%c4, %c0_25] : memref<9x1024xf32, #tpu.memory_space<vmem>>, vector<1x1024xf32>
    tpu.vector_store %arg10[%c4, %c0_25], %43 {strides = array<i32>} : memref<9x1024xf32, #tpu.memory_space<vmem>>, vector<1x1024xf32>,
    %45 = vector.extract_strided_slice %30 {offsets = [5, 0], sizes = [1, 1024], strides = [1, 1]} : vector<9x1024xf32> to vector<1x1024xf32>
    %c1_i32 = arith.constant 1 : i32
    %46 = tpu.dynamic_rotate %45 by %c1_i32 dim 1 : vector<1x1024xf32>, i32 -> vector<1x1024xf32>
    %c5 = arith.constant 5 : index
    %c0_26 = arith.constant 0 : index
    %47 = vector.load %arg10[%c5, %c0_26] : memref<9x1024xf32, #tpu.memory_space<vmem>>, vector<1x1024xf32>
    tpu.vector_store %arg10[%c5, %c0_26], %46 {strides = array<i32>} : memref<9x1024xf32, #tpu.memory_space<vmem>>, vector<1x1024xf32>,
    %48 = vector.extract_strided_slice %30 {offsets = [6, 0], sizes = [1, 1024], strides = [1, 1]} : vector<9x1024xf32> to vector<1x1024xf32>
    %c15_i32 = arith.constant 15 : i32
    %49 = tpu.dynamic_rotate %48 by %c15_i32 dim 1 : vector<1x1024xf32>, i32 -> vector<1x1024xf32>
    %c6 = arith.constant 6 : index
    %c0_27 = arith.constant 0 : index
    %50 = vector.load %arg10[%c6, %c0_27] : memref<9x1024xf32, #tpu.memory_space<vmem>>, vector<1x1024xf32>
    tpu.vector_store %arg10[%c6, %c0_27], %49 {strides = array<i32>} : memref<9x1024xf32, #tpu.memory_space<vmem>>, vector<1x1024xf32>,
    %51 = vector.extract_strided_slice %30 {offsets = [7, 0], sizes = [1, 1024], strides = [1, 1]} : vector<9x1024xf32> to vector<1x1024xf32>
    %c16_i32 = arith.constant 16 : i32
    %52 = tpu.dynamic_rotate %51 by %c16_i32 dim 1 : vector<1x1024xf32>, i32 -> vector<1x1024xf32>
    %c7 = arith.constant 7 : index
    %c0_28 = arith.constant 0 : index
    %53 = vector.load %arg10[%c7, %c0_28] : memref<9x1024xf32, #tpu.memory_space<vmem>>, vector<1x1024xf32>
    tpu.vector_store %arg10[%c7, %c0_28], %52 {strides = array<i32>} : memref<9x1024xf32, #tpu.memory_space<vmem>>, vector<1x1024xf32>,
    %54 = vector.extract_strided_slice %30 {offsets = [8, 0], sizes = [1, 1024], strides = [1, 1]} : vector<9x1024xf32> to vector<1x1024xf32>
    %c17_i32 = arith.constant 17 : i32
    %55 = tpu.dynamic_rotate %54 by %c17_i32 dim 1 : vector<1x1024xf32>, i32 -> vector<1x1024xf32>
    %c8 = arith.constant 8 : index
    %c0_29 = arith.constant 0 : index
    %56 = vector.load %arg10[%c8, %c0_29] : memref<9x1024xf32, #tpu.memory_space<vmem>>, vector<1x1024xf32>
    tpu.vector_store %arg10[%c8, %c0_29], %55 {strides = array<i32>} : memref<9x1024xf32, #tpu.memory_space<vmem>>, vector<1x1024xf32>,
    %c0_30 = arith.constant 0 : index
    %c0_31 = arith.constant 0 : index
    %57 = vector.load %arg10[%c0_30, %c0_31] : memref<9x1024xf32, #tpu.memory_space<vmem>>, vector<9x1024xf32>
    %cst_32 = arith.constant dense<0xFF800000> : vector<1024xf32>
    %58 = vector.multi_reduction <maximumf>, %57, %cst_32 [0] : vector<9x1024xf32> to vector<1024xf32>
    %59 = vector.shape_cast %58 : vector<1024xf32> to vector<1x1024xf32>
    %60 = vector.broadcast %59 : vector<1x1024xf32> to vector<9x1024xf32>
    %61 = arith.subf %57, %60 : vector<9x1024xf32>
    %62 = math.exp %61 : vector<9x1024xf32>
    %cst_33 = arith.constant dense<0.000000e+00> : vector<1024xf32>
    %63 = vector.multi_reduction <add>, %62, %cst_33 [0] : vector<9x1024xf32> to vector<1024xf32>
    %64 = vector.shape_cast %63 : vector<1024xf32> to vector<1x1024xf32>
    %65 = math.log %64 : vector<1x1024xf32>
    %66 = arith.addf %59, %65 : vector<1x1024xf32>
    %c0_34 = arith.constant 0 : index
    %c0_35 = arith.constant 0 : index
    %67 = vector.load %arg9[%c0_34, %c0_35] : memref<1x1024xf32, #tpu.memory_space<vmem>>, vector<1x1024xf32>
    tpu.vector_store %arg9[%c0_34, %c0_35], %66 {strides = array<i32>} : memref<1x1024xf32, #tpu.memory_space<vmem>>, vector<1x1024xf32>,
    return
  }
  func.func @transform_0(%arg0: i32) -> (i32, i32) {
    %c0_i32 = arith.constant 0 : i32
    %c0_i32_0 = arith.constant 0 : i32
    return %c0_i32, %arg0 : i32, i32
  }
  func.func @transform_1(%arg0: i32) -> (i32, i32) {
    %c0_i32 = arith.constant 0 : i32
    %c0_i32_0 = arith.constant 0 : i32
    return %c0_i32, %arg0 : i32, i32
  }
  func.func @transform_2(%arg0: i32) -> (i32, i32) {
    %c0_i32 = arith.constant 0 : i32
    %c0_i32_0 = arith.constant 0 : i32
    return %c0_i32, %arg0 : i32, i32
  }
  func.func @transform_3(%arg0: i32) -> (i32, i32) {
    %c0_i32 = arith.constant 0 : i32
    %c0_i32_0 = arith.constant 0 : i32
    %c0_i32_1 = arith.constant 0 : i32
    return %c0_i32, %c0_i32_0 : i32, i32
  }
  func.func @transform_4(%arg0: i32) -> (i32, i32) {
    %c0_i32 = arith.constant 0 : i32
    %c0_i32_0 = arith.constant 0 : i32
    %c0_i32_1 = arith.constant 0 : i32
    return %c0_i32, %c0_i32_0 : i32, i32
  }
  func.func @transform_5(%arg0: i32) -> (i32, i32) {
    %c0_i32 = arith.constant 0 : i32
    %c0_i32_0 = arith.constant 0 : i32
    %c0_i32_1 = arith.constant 0 : i32
    return %c0_i32, %c0_i32_0 : i32, i32
  }
  func.func @transform_6(%arg0: i32) -> (i32, i32) {
    %c0_i32 = arith.constant 0 : i32
    %c0_i32_0 = arith.constant 0 : i32
    %c0_i32_1 = arith.constant 0 : i32
    return %c0_i32, %c0_i32_0 : i32, i32
  }
  func.func @transform_7(%arg0: i32) -> (i32, i32) {
    %c0_i32 = arith.constant 0 : i32
    %c0_i32_0 = arith.constant 0 : i32
    %c0_i32_1 = arith.constant 0 : i32
    return %c0_i32, %c0_i32_0 : i32, i32
  }
  func.func @transform_8(%arg0: i32) -> (i32, i32) {
    %c0_i32 = arith.constant 0 : i32
    %c0_i32_0 = arith.constant 0 : i32
    return %c0_i32, %arg0 : i32, i32
  }
}

</mosaic_0001>

<bundles_post_ra>
// kernel: tpu_custom_call.1
= control target key start
LH: loop header
LB: loop body
LE: loop exit
PB: predicated region body
PF: predicated region fallthrough
CT: control target
= control target key end

     0   :  { %13 = vsyncpa [#allocation4], 0  ;;  %s4044_s0 = inlined_call_operand.vmem [shape: f32[4,1024], index: 0, kind: input, shape index: {}]   ;;  %s4045_s1 = inlined_call_operand.vmem [shape: f32[1,1024], index: 1, kind: input, shape index: {}]   ;;  %s4046_s2 = inlined_call_operand.hbm [shape: f32[9,1024], index: 2, kind: input, shape index: {}]   ;;  %s4047_s3 = inlined_call_operand.hbm [shape: f32[9,1024], index: 3, kind: input, shape index: {}]   ;;  %s4048_s4 = inlined_call_operand.vmem [shape: f32[32,4], index: 4, kind: input, shape index: {}]   ;;  %s4049_s5 = inlined_call_operand.vmem [shape: f32[32,1], index: 5, kind: input, shape index: {}]   ;;  %s4050_s6 = inlined_call_operand.vmem [shape: f32[9,32], index: 6, kind: input, shape index: {}]   ;;  %s4051_s7 = inlined_call_operand.vmem [shape: f32[9,4], index: 7, kind: input, shape index: {}]   ;;  %s4052_s8 = inlined_call_operand.hbm [shape: f32[1,1024], index: 8, kind: output, shape index: {}]  }
   0x1   :  { %14 = vsyncpa [#allocation7], 0 }
   0x2   :  { %15 = vsyncpa [#allocation5], 0  ;;  %s2911_s27 = smov [#allocation3]   ;;  %s2839_s9 = scalar_lea.hbm %s4046_s2, 2048 }
   0x3   :  { %s25_s28 = sshll.u32 %s2911_s27, 4  ;;  %p2840_p0 = scmp.ne.s32.totalorder %s4046_s2, %s2839_s9  ;;  %s26_s28 = int_to_ptr.vmem [resolvable:$true] %s25_s28 }
   0x4   :  { %p2843_p1 = scmp.lt.u32.totalorder %s2839_s9, %s4046_s2 }
   0x6   :  { %p2845_p2 = pnand %p2843_p1, %p2840_p0 }
   0x8   :  { %2848 = shalt.err (!%p2845_p2)
}
   0x9   :  { %s2849_s14 = scalar_lea.vmem %s26_s28, 2048  ;;  %p2854_p4 = scmp.lt.s32.totalorder %s26_s28, %s26_s28 }
   0xa   :  { %p2850_p3 = scmp.ne.s32.totalorder %s26_s28, %s2849_s14  ;;  %p2855_p5 = scmp.lt.s32.totalorder %s2849_s14, %s2849_s14 }
   0xc   :  { %p2856_p6 = por %p2855_p5, %p2854_p4 }
   0xe   :  { %p2857_p7 = pnand %p2856_p6, %p2850_p3 }
  0x10   :  { %2860 = shalt.err (!%p2857_p7)
}
  0x11   :  { %s2912_s15 = smov 1024   ;;  %s2913_s16 = smov 64  }
  0x12   :  { %31 = dma.hbm_to_vmem [thread:$0]  %s4046_s2, 2048, %s26_s28, [#allocation4], %s2912_s15, %s2912_s15, %s2913_s16  }
  0x13   :  { %s2914_s19 = smov [#allocation6]   ;;  %s2861_s23 = scalar_lea.hbm %s4047_s3, 2048 }
  0x14   :  { %s37_s20 = sshll.u32 %s2914_s19, 4  ;;  %p2862_p8 = scmp.ne.s32.totalorder %s4047_s3, %s2861_s23  ;;  %s38_s20 = int_to_ptr.vmem [resolvable:$true] %s37_s20 }
  0x15   :  { %p2865_p9 = scmp.lt.u32.totalorder %s2861_s23, %s4047_s3 }
  0x17   :  { %p2867_p10 = pnand %p2865_p9, %p2862_p8 }
  0x19   :  { %2870 = shalt.err (!%p2867_p10)
}
  0x1a   :  { %s2871_s29 = scalar_lea.vmem %s38_s20, 2048  ;;  %p2876_p12 = scmp.lt.s32.totalorder %s38_s20, %s38_s20 }
  0x1b   :  { %p2872_p11 = scmp.ne.s32.totalorder %s38_s20, %s2871_s29  ;;  %p2877_p13 = scmp.lt.s32.totalorder %s2871_s29, %s2871_s29 }
  0x1d   :  { %p2878_p0 = por %p2877_p13, %p2876_p12 }
  0x1f   :  { %p2879_p1 = pnand %p2878_p0, %p2872_p11 }
  0x21   :  { %2882 = shalt.err (!%p2879_p1)
}
  0x22   :  { %43 = dma.hbm_to_vmem [thread:$0]  %s4047_s3, 2048, %s38_s20, [#allocation7], %s2912_s15, %s2912_s15, %s2913_s16  }
  0x23   :  { %2905 = dma.done.wait [#allocation4], 2048  }
  0x24   :  { %2906 = vsyncadd [#allocation4], 4294965248 }
  0x25   :  { %2907 = dma.done.wait [#allocation7], 2048  }
  0x26   :  { %2908 = vsyncadd [#allocation7], 4294965248  ;;  %v2915_v0 = vmov 0.0   ;;  %v2916_v1 = vmov 0   ;;  %v3001_v2 = vld [vmem:[%s4044_s0] sm:$0xff]  ;;  %vm111_vm0 = vcmask 1043456  }
  0x27   :  { %192 = vmatprep.mubr.f32.mxu0 %v2915_v0  ;;  %281 = vmatprep.mubr.f32.mxu1 %v2915_v0  ;;  %v3006_v3 = vld [vmem:[%s4044_s0 + $0x8] sm:$0xff]  ;;  %v3010_v4 = vcombine.high %v3001_v2, %v3001_v2  ;;  %v3019_v6 = vld [vmem:[%s4044_s0 + $0x10] sm:$0xff]  ;;  %v3024_v7 = vld [vmem:[%s4044_s0 + $0x18] sm:$0xff]  ;;  %vm98_vm1 = vcmask 31744   ;;  %vm520_vm2 = vcmask 261120   ;;  %vm1181_vm3 = vcmask 1040384  }
  0x28   :  { %2737 = vset.pattern.permute.xlu0 %v2916_v1  ;;  %2738 = vset.pattern.permute.xlu1 %v2916_v1  ;;  %v3014_v5 = vcombine.high %v3006_v3, %v3006_v3  ;;  %v62_v8 = vld [vmem:[%s4048_s4] sm:$0xff]  ;;  %v3031_v9 = vcombine.high %v3019_v6, %v3019_v6  ;;  %v3043_v10 = vcombine.high %v3024_v7, %v3024_v7  ;;  %v63_v12 = vld [vmem:[%s4048_s4 + $0x8] sm:$0xff]  ;;  %v68_v13 = vld [vmem:[%s4049_s5 + $0x10] sm:$0xff]  ;;  %s2919_s12 = smov 111   ;;  %s2920_s13 = smov 112  }
  0x29   :  { %2625 = vmatprep.subr.msk.mxu0 %vm111_vm0, %v3010_v4  ;;  %v66_v11 = vld [vmem:[%s4049_s5] sm:$0xff]  ;;  %v67_v14 = vld [vmem:[%s4049_s5 + $0x8] sm:$0xff]  ;;  %v64_v15 = vld [vmem:[%s4048_s4 + $0x10] sm:$0xff]  ;;  %82 = vperm.xlu1 %2738, %v68_v13   ;;  %s2921_s14 = smov 113   ;;  %s2922_s15 = smov 127  }
  0x2a   :  { %2631 = vmatprep.subr.msk.mxu1 %vm111_vm0, %v3014_v5  ;;  %2626 = vmatpush1.msk.msra.mxu0 %vm111_vm0, %v3001_v2  ;;  %v69_v16 = vld [vmem:[%s4049_s5 + $0x18] sm:$0xff]  ;;  %s2923_s16 = smov 1   ;;  %s2924_s0 = smov 15  }
  0x2b   :  { %2632 = vmatpush1.msk.msra.mxu1 %vm111_vm0, %v3006_v3  ;;  %2627 = vmatmul.mubr.msk.f32.vlgmr.msra.gmra.mrb[0].mxu0 %vm98_vm1, %v62_v8  ;;  %v65_v17 = vld [vmem:[%s4048_s4 + $0x18] sm:$0xff]  ;;  %s2925_s17 = smov 16   ;;  %s2926_s18 = smov [#allocation8]  }
  0x2c   :  { %2633 = vmatmul.mubr.msk.f32.vlgmr.msra.gmra.mrb[0].mxu1 %vm98_vm1, %v62_v8  ;;  %2637 = vmatprep.subr.msk.mxu0 %vm111_vm0, %v3031_v9  ;;  %s2615_s19 = sshll.u32 %s2926_s18, 4  ;;  %s2616_s19 = int_to_ptr.vmem [resolvable:$true] %s2615_s19 }
  0x2d   :  { %198 = vmatprep.mubr.f32.mxu0 %v2915_v0  ;;  %2638 = vmatpush1.msk.msra.mxu0 %vm111_vm0, %v3019_v6  ;;  %s2883_s20 = scalar_lea.vmem %s2616_s19, 128  ;;  %p2888_p3 = scmp.lt.s32.totalorder %s2616_s19, %s2616_s19 }
  0x2e   :  { %287 = vmatprep.mubr.f32.mxu1 %v2915_v0  ;;  %2643 = vmatprep.subr.msk.mxu1 %vm111_vm0, %v3043_v10  ;;  %p2884_p2 = scmp.ne.s32.totalorder %s2616_s19, %s2883_s20  ;;  %p2889_p4 = scmp.lt.s32.totalorder %s2883_s20, %s2883_s20 }
  0x2f   :  { %72 = vperm.xlu0 %2737, %v66_v11   ;;  %2628 = vmatmul.mubr.msk.f32.gmra.mrb[2].mxu0 %vm98_vm1, %v63_v12 }
  0x30   :  { %2634 = vmatmul.mubr.msk.f32.gmra.mrb[2].mxu1 %vm98_vm1, %v63_v12  ;;  %204 = vmatprep.mubr.f32.mxu0 %v2915_v0  ;;  %p2890_p5 = por %p2889_p4, %p2888_p3 }
  0x31   :  { %2644 = vmatpush1.msk.msra.mxu1 %vm111_vm0, %v3024_v7  ;;  %293 = vmatprep.mubr.f32.mxu1 %v2915_v0 }
  0x32   :  { %87 = vperm.xlu1 %2738, %v69_v16   ;;  %p2891_p6 = pnand %p2890_p5, %p2884_p2 }
  0x33   :  { %77 = vperm.xlu0 %2737, %v67_v14   ;;  %2629 = vmatmul.mubr.msk.f32.gmra.mrb[4].mxu0 %vm98_vm1, %v64_v15 }
  0x34   :  { %2635 = vmatmul.mubr.msk.f32.gmra.mrb[4].mxu1 %vm98_vm1, %v64_v15  ;;  %210 = vmatprep.mubr.f32.mxu0 %v2915_v0 }
  0x35   :  { %299 = vmatprep.mubr.f32.mxu1 %v2915_v0 }
  0x37   :  { %2630 = vmatmul.mubr.msk.f32.gmra.mrb[6].mxu0 %vm98_vm1, %v65_v17 }
  0x38   :  { %2636 = vmatmul.mubr.msk.f32.gmra.mrb[6].mxu1 %vm98_vm1, %v65_v17  ;;  %370 = vmatprep.mubr.f32.mxu0 %v2915_v0 }
  0x39   :  { %459 = vmatprep.mubr.f32.mxu1 %v2915_v0 }
  0x3b   :  { %2639 = vmatmul.mubr.msk.f32.vlgmr.msra.gmra.mrb[8].mxu0 %vm98_vm1, %v62_v8 }
  0x3c   :  { %2645 = vmatmul.mubr.msk.f32.vlgmr.msra.gmra.mrb[8].mxu1 %vm98_vm1, %v62_v8  ;;  %376 = vmatprep.mubr.f32.mxu0 %v2915_v0 }
  0x3d   :  { %465 = vmatprep.mubr.f32.mxu1 %v2915_v0 }
  0x3f   :  { %2640 = vmatmul.mubr.msk.f32.gmra.mrb[10].mxu0 %vm98_vm1, %v63_v12 }
  0x40   :  { %2646 = vmatmul.mubr.msk.f32.gmra.mrb[10].mxu1 %vm98_vm1, %v63_v12  ;;  %382 = vmatprep.mubr.f32.mxu0 %v2915_v0 }
  0x41   :  { %471 = vmatprep.mubr.f32.mxu1 %v2915_v0 }
  0x43   :  { %2641 = vmatmul.mubr.msk.f32.gmra.mrb[12].mxu0 %vm98_vm1, %v64_v15 }
  0x44   :  { %2647 = vmatmul.mubr.msk.f32.gmra.mrb[12].mxu1 %vm98_vm1, %v64_v15  ;;  %388 = vmatprep.mubr.f32.mxu0 %v2915_v0 }
  0x45   :  { %477 = vmatprep.mubr.f32.mxu1 %v2915_v0 }
  0x47   :  { %2642 = vmatmul.mubr.msk.f32.gmra.mrb[14].mxu0 %vm98_vm1, %v65_v17 }
  0x48   :  { %2648 = vmatmul.mubr.msk.f32.gmra.mrb[14].mxu1 %vm98_vm1, %v65_v17  ;;  %591 = vmatprep.mubr.f32.mxu0 %v2915_v0 }
  0x49   :  { %668 = vmatprep.mubr.f32.mxu1 %v2915_v0 }
  0xa8   :  { %v3113_v27 = vpop.permute.xlu1 %82 }
  0xae   :  { %v3106_v18 = vpop.permute.xlu0 %72 }
  0xb1   :  { %v3122_v55 = vpop.permute.xlu1 %87 }
  0xb2   :  { %v3110_v25 = vpop.permute.xlu0 %77 }
  0xfe   :  { %v194_v19 = vpop.f32.mrb[0].mxu0 }
  0xff   :  { %v283_v20 = vpop.f32.mrb[0].mxu1  ;;  %v196_v21 = vpop.f32.mrb[1].mxu0  ;;  %v195_v26 = vadd.f32 %v194_v19, %v3106_v18 }
 0x100   :  { %v284_v22 = vadd.f32 %v283_v20, %v3106_v18  ;;  %v285_v23 = vpop.f32.mrb[1].mxu1  ;;  %v197_v28 = vadd.f32 %v196_v21, %v3106_v18 }
 0x101   :  { %v286_v24 = vadd.f32 %v285_v23, %v3106_v18  ;;  %v484_v39 = vmax.f32 %v195_v26, 0.0 }
 0x102   :  { %v200_v29 = vpop.f32.mrb[2].mxu0  ;;  %v486_v31 = vmax.f32 %v284_v22, 0.0  ;;  %v485_v42 = vmax.f32 %v197_v28, 0.0 }
 0x103   :  { %v289_v30 = vpop.f32.mrb[2].mxu1  ;;  %v201_v32 = vadd.f32 %v200_v29, %v3110_v25  ;;  %v202_v34 = vpop.f32.mrb[3].mxu0  ;;  %v487_v36 = vmax.f32 %v286_v24, 0.0 }
 0x104   :  { %v290_v33 = vadd.f32 %v289_v30, %v3110_v25  ;;  %v291_v35 = vpop.f32.mrb[3].mxu1  ;;  %v203_v37 = vadd.f32 %v202_v34, %v3110_v25 }
 0x105   :  { %v292_v38 = vadd.f32 %v291_v35, %v3110_v25  ;;  %v492_v40 = vmax.f32 %v201_v32, 0.0 }
 0x106   :  { %v494_v41 = vmax.f32 %v290_v33, 0.0  ;;  %v493_v43 = vmax.f32 %v203_v37, 0.0  ;;  %v206_v45 = vpop.f32.mrb[4].mxu0 }
 0x107   :  { %v495_v44 = vmax.f32 %v292_v38, 0.0  ;;  %v295_v46 = vpop.f32.mrb[4].mxu1  ;;  %v2675_v47 = vpack.c.bf16 %v492_v40, %v484_v39  ;;  %v208_v49 = vpop.f32.mrb[5].mxu0  ;;  %v207_v56 = vadd.f32 %v206_v45, %v3113_v27  ;;  %v3139_v40 = vld [vmem:[%s4050_s6] sm:$0xff] }
 0x108   :  { %v2683_v48 = vpack.c.bf16 %v494_v41, %v486_v31  ;;  %v296_v50 = vadd.f32 %v295_v46, %v3113_v27  ;;  %v297_v51 = vpop.f32.mrb[5].mxu1  ;;  %v2673_v52 = vpack.c.bf16 %v493_v43, %v485_v42  ;;  %v209_v57 = vadd.f32 %v208_v49, %v3113_v27 }
 0x109   :  { %v2681_v53 = vpack.c.bf16 %v495_v44, %v487_v36  ;;  %v298_v54 = vadd.f32 %v297_v51, %v3113_v27  ;;  %v500_v13 = vmax.f32 %v207_v56, 0.0 }
 0x10a   :  { %v212_v58 = vpop.f32.mrb[6].mxu0  ;;  %2674 = vmatprep.subr.bf16.mxu0 %v2673_v52  ;;  %v502_v60 = vmax.f32 %v296_v50, 0.0  ;;  %v501_v16 = vmax.f32 %v209_v57, 0.0 }
 0x10b   :  { %v301_v59 = vpop.f32.mrb[6].mxu1  ;;  %2682 = vmatprep.subr.bf16.mxu1 %v2681_v53  ;;  %v213_v61 = vadd.f32 %v212_v58, %v3122_v55  ;;  %v214_v63 = vpop.f32.mrb[7].mxu0  ;;  %2676 = vmatpush1.bf16.msra.mxu0 %v2675_v47  ;;  %v503_v8 = vmax.f32 %v298_v54, 0.0 }
 0x10c   :  { %v302_v62 = vadd.f32 %v301_v59, %v3122_v55  ;;  %v303_v1 = vpop.f32.mrb[7].mxu1  ;;  %2684 = vmatpush1.bf16.msra.mxu1 %v2683_v48  ;;  %v215_v11 = vadd.f32 %v214_v63, %v3122_v55 }
 0x10d   :  { %v304_v12 = vadd.f32 %v303_v1, %v3122_v55  ;;  %v508_v14 = vmax.f32 %v213_v61, 0.0 }
 0x10e   :  { %v510_v15 = vmax.f32 %v302_v62, 0.0  ;;  %v509_v17 = vmax.f32 %v215_v11, 0.0  ;;  %v372_v20 = vpop.f32.mrb[8].mxu0 }
 0x10f   :  { %v511_v19 = vmax.f32 %v304_v12, 0.0  ;;  %v461_v21 = vpop.f32.mrb[8].mxu1  ;;  %v2679_v22 = vpack.c.bf16 %v508_v14, %v500_v13  ;;  %v374_v24 = vpop.f32.mrb[9].mxu0  ;;  %v373_v30 = vadd.f32 %v372_v20, %v3106_v18 }
 0x110   :  { %v2687_v23 = vpack.c.bf16 %v510_v15, %v502_v60  ;;  %v463_v26 = vpop.f32.mrb[9].mxu1  ;;  %v2677_v28 = vpack.c.bf16 %v509_v17, %v501_v16  ;;  %v462_v31 = vadd.f32 %v461_v21, %v3106_v18  ;;  %v375_v32 = vadd.f32 %v374_v24, %v3106_v18  ;;  %v519_v60 = vld [vmem:[%s4050_s6 + $0x8] sm:$0x1] }
 0x111   :  { %v2685_v29 = vpack.c.bf16 %v511_v19, %v503_v8  ;;  %v464_v33 = vadd.f32 %v463_v26, %v3106_v18  ;;  %v488_v42 = vmax.f32 %v373_v30, 0.0  ;;  %v1151_v30 = vld [vmem:[#allocation3 + $0x10] sm:$0xff] }
 0x112   :  { %v378_v34 = vpop.f32.mrb[10].mxu0  ;;  %2678 = vmatprep.subr.bf16.mxu0 %v2677_v28  ;;  %v490_v43 = vmax.f32 %v462_v31, 0.0  ;;  %v489_v46 = vmax.f32 %v375_v32, 0.0  ;;  %v1158_v31 = vld [vmem:[#allocation3 + $0x48] sm:$0x1] }
 0x113   :  { %v467_v35 = vpop.f32.mrb[10].mxu1  ;;  %2686 = vmatprep.subr.bf16.mxu1 %v2685_v29  ;;  %v379_v36 = vadd.f32 %v378_v34, %v3110_v25  ;;  %v380_v38 = vpop.f32.mrb[11].mxu0  ;;  %2680 = vmatpush1.bf16.msra.mxu0 %v2679_v22  ;;  %v491_v47 = vmax.f32 %v464_v33, 0.0  ;;  %v1159_v29 = vld [vmem:[#allocation3 + $0x50] sm:$0x1]  ;;  %v1150_v33 = vld [vmem:[#allocation3 + $0x8] sm:$0xff] }
 0x114   :  { %v468_v37 = vadd.f32 %v467_v35, %v3110_v25  ;;  %v469_v39 = vpop.f32.mrb[11].mxu1  ;;  %2688 = vmatpush1.bf16.msra.mxu1 %v2687_v23  ;;  %v381_v18 = vadd.f32 %v380_v38, %v3110_v25  ;;  %v1160_v32 = vld [vmem:[#allocation3 + $0x58] sm:$0x1] }
 0x115   :  { %v470_v41 = vadd.f32 %v469_v39, %v3110_v25  ;;  %v496_v44 = vmax.f32 %v379_v36, 0.0  ;;  %v1152_v34 = vld [vmem:[#allocation3 + $0x18] sm:$0xff] }
 0x116   :  { %v498_v45 = vmax.f32 %v468_v37, 0.0  ;;  %v497_v48 = vmax.f32 %v381_v18, 0.0  ;;  %v384_v50 = vpop.f32.mrb[12].mxu0  ;;  %2649 = vmatmul.mubr.msk.f32.vlgmr.msra.gmra.mrb[16].mxu0 %vm520_vm2, %v3139_v40 }
 0x117   :  { %v499_v49 = vmax.f32 %v470_v41, 0.0  ;;  %v473_v51 = vpop.f32.mrb[12].mxu1  ;;  %2651 = vmatmul.mubr.msk.f32.vlgmr.msra.gmra.mrb[16].mxu1 %vm520_vm2, %v3139_v40  ;;  %v2691_v52 = vpack.c.bf16 %v496_v44, %v488_v42  ;;  %v386_v54 = vpop.f32.mrb[13].mxu0  ;;  %597 = vmatprep.mubr.f32.mxu0 %v2915_v0  ;;  %v385_v58 = vadd.f32 %v384_v50, %v3113_v27 }
 0x118   :  { %v2699_v53 = vpack.c.bf16 %v498_v45, %v490_v43  ;;  %v475_v25 = vpop.f32.mrb[13].mxu1  ;;  %v2689_v56 = vpack.c.bf16 %v497_v48, %v489_v46  ;;  %674 = vmatprep.mubr.f32.mxu1 %v2915_v0  ;;  %v474_v59 = vadd.f32 %v473_v51, %v3113_v27  ;;  %v387_v61 = vadd.f32 %v386_v54, %v3113_v27  ;;  %v1155_v54 = vld [vmem:[#allocation3 + $0x30] sm:$0xff] }
 0x119   :  { %v2697_v57 = vpack.c.bf16 %v499_v49, %v491_v47  ;;  %v476_v62 = vadd.f32 %v475_v25, %v3113_v27  ;;  %v504_v27 = vmax.f32 %v385_v58, 0.0  ;;  %v1154_v58 = vld [vmem:[#allocation3 + $0x28] sm:$0xff] }
 0x11a   :  { %v390_v63 = vpop.f32.mrb[14].mxu0  ;;  %2690 = vmatprep.subr.bf16.mxu0 %v2689_v56  ;;  %2650 = vmatmul.mubr.msk.f32.gmra.mrb[18].mxu0 %vm520_vm2, %v519_v60  ;;  %v506_v16 = vmax.f32 %v474_v59, 0.0  ;;  %v505_v20 = vmax.f32 %v387_v61, 0.0 }
 0x11b   :  { %v479_v1 = vpop.f32.mrb[14].mxu1  ;;  %2698 = vmatprep.subr.bf16.mxu1 %v2697_v57  ;;  %v391_v8 = vadd.f32 %v390_v63, %v3122_v55  ;;  %v392_v12 = vpop.f32.mrb[15].mxu0  ;;  %2692 = vmatpush1.bf16.msra.mxu0 %v2691_v52  ;;  %v507_v21 = vmax.f32 %v476_v62, 0.0  ;;  %v1153_v52 = vld [vmem:[#allocation3 + $0x20] sm:$0xff] }
 0x11c   :  { %v480_v11 = vadd.f32 %v479_v1, %v3122_v55  ;;  %v481_v13 = vpop.f32.mrb[15].mxu1  ;;  %2700 = vmatpush1.bf16.msra.mxu1 %v2699_v53  ;;  %v393_v14 = vadd.f32 %v392_v12, %v3122_v55  ;;  %745 = vmatprep.mubr.f32.mxu0 %v2915_v0  ;;  %v1161_v63 = vld [vmem:[#allocation3 + $0x60] sm:$0x1]  ;;  %v1163_v1 = vld [vmem:[#allocation3 + $0x70] sm:$0x1] }
 0x11d   :  { %v482_v15 = vadd.f32 %v481_v13, %v3122_v55  ;;  %2652 = vmatmul.mubr.msk.f32.gmra.mrb[18].mxu1 %vm520_vm2, %v519_v60  ;;  %v512_v17 = vmax.f32 %v391_v8, 0.0 }
 0x11e   :  { %v514_v19 = vmax.f32 %v480_v11, 0.0  ;;  %822 = vmatprep.mubr.f32.mxu1 %v2915_v0  ;;  %v513_v22 = vmax.f32 %v393_v14, 0.0  ;;  %v1162_v14 = vld [vmem:[#allocation3 + $0x68] sm:$0x1] }
 0x11f   :  { %v515_v23 = vmax.f32 %v482_v15, 0.0  ;;  %v2695_v24 = vpack.c.bf16 %v512_v17, %v504_v27  ;;  %v1164_v15 = vld [vmem:[#allocation3 + $0x78] sm:$0x1] }
 0x120   :  { %v2703_v26 = vpack.c.bf16 %v514_v19, %v506_v16  ;;  %v2693_v28 = vpack.c.bf16 %v513_v22, %v505_v20 }
 0x121   :  { %v2701_v55 = vpack.c.bf16 %v515_v23, %v507_v21 }
 0x122   :  { %2694 = vmatprep.subr.bf16.mxu0 %v2693_v28 }
 0x123   :  { %2702 = vmatprep.subr.bf16.mxu1 %v2701_v55  ;;  %2696 = vmatpush1.bf16.msra.mxu0 %v2695_v24 }
 0x124   :  { %2704 = vmatpush1.bf16.msra.mxu1 %v2703_v26  ;;  %2657 = vmatprep.subr.msk.mxu0 %vm111_vm0, %v3010_v4 }
 0x125   :  { %2661 = vmatprep.subr.msk.mxu1 %vm111_vm0, %v3014_v5 }
 0x126   :  { %2653 = vmatmul.mubr.msk.f32.vlgmr.msra.gmra.mrb[20].mxu0 %vm520_vm2, %v3139_v40 }
 0x127   :  { %2655 = vmatmul.mubr.msk.f32.vlgmr.msra.gmra.mrb[20].mxu1 %vm520_vm2, %v3139_v40  ;;  %2658 = vmatpush1.msk.msra.mxu0 %vm111_vm0, %v3001_v2  ;;  %v516_v2 = vld [vmem:[%s4051_s7] sm:$0xff] }
 0x128   :  { %751 = vmatprep.mubr.f32.mxu0 %v2915_v0  ;;  %828 = vmatprep.mubr.f32.mxu1 %v2915_v0 }
 0x129   :  { %2662 = vmatpush1.msk.msra.mxu1 %vm111_vm0, %v3006_v3  ;;  %2665 = vmatprep.subr.msk.mxu0 %vm111_vm0, %v3031_v9  ;;  %v517_v3 = vld [vmem:[%s4051_s7 + $0x8] sm:$0x1]  ;;  %v1149_v9 = vld [vmem:[#allocation3] sm:$0xff] }
 0x12a   :  { %2669 = vmatprep.subr.msk.mxu1 %vm111_vm0, %v3043_v10  ;;  %2654 = vmatmul.mubr.msk.f32.gmra.mrb[22].mxu0 %vm520_vm2, %v519_v60  ;;  %v1157_v10 = vld [vmem:[#allocation3 + $0x40] sm:$0x1] }
 0x12b   :  { %2656 = vmatmul.mubr.msk.f32.gmra.mrb[22].mxu1 %vm520_vm2, %v519_v60  ;;  %905 = vmatprep.mubr.f32.mxu0 %v2915_v0  ;;  %v1156_v60 = vld [vmem:[#allocation3 + $0x38] sm:$0xff] }
 0x12c   :  { %982 = vmatprep.mubr.f32.mxu1 %v2915_v0 }
 0x12e   :  { %2659 = vmatmul.mubr.msk.f32.vlgmr.msra.gmra.mrb[16].mxu0 %vm98_vm1, %v516_v2 }
 0x12f   :  { %2663 = vmatmul.mubr.msk.f32.vlgmr.msra.gmra.mrb[16].mxu1 %vm98_vm1, %v516_v2  ;;  %911 = vmatprep.mubr.f32.mxu0 %v2915_v0 }
 0x130   :  { %988 = vmatprep.mubr.f32.mxu1 %v2915_v0  ;;  %2666 = vmatpush1.msk.msra.mxu0 %vm111_vm0, %v3019_v6 }
 0x131   :  { %2670 = vmatpush1.msk.msra.mxu1 %vm111_vm0, %v3024_v7 }
 0x132   :  { %2660 = vmatmul.mubr.msk.f32.gmra.mrb[18].mxu0 %vm98_vm1, %v517_v3 }
 0x133   :  { %2664 = vmatmul.mubr.msk.f32.gmra.mrb[18].mxu1 %vm98_vm1, %v517_v3  ;;  %1059 = vmatprep.mubr.f32.mxu0 %v2915_v0 }
 0x134   :  { %1136 = vmatprep.mubr.f32.mxu1 %v2915_v0 }
 0x136   :  { %2667 = vmatmul.mubr.msk.f32.vlgmr.msra.gmra.mrb[20].mxu0 %vm98_vm1, %v516_v2 }
 0x137   :  { %2671 = vmatmul.mubr.msk.f32.vlgmr.msra.gmra.mrb[20].mxu1 %vm98_vm1, %v516_v2  ;;  %1065 = vmatprep.mubr.f32.mxu0 %v2915_v0 }
 0x138   :  { %1142 = vmatprep.mubr.f32.mxu1 %v2915_v0 }
 0x13a   :  { %2668 = vmatmul.mubr.msk.f32.gmra.mrb[22].mxu0 %vm98_vm1, %v517_v3 }
 0x13b   :  { %2672 = vmatmul.mubr.msk.f32.gmra.mrb[22].mxu1 %vm98_vm1, %v517_v3 }
 0x201   :  { %v907_v4 = vpop.f32.mrb[16].mxu0 }
 0x202   :  { %v984_v5 = vpop.f32.mrb[16].mxu1  ;;  %v909_v6 = vpop.f32.mrb[17].mxu0  ;;  %v3214_v40 = vadd.f32 %v1149_v9, %v907_v4 }
 0x203   :  { %v986_v7 = vpop.f32.mrb[17].mxu1  ;;  %v3216_v18 = vadd.f32 %v1151_v30, %v984_v5  ;;  %v3222_v43 = vadd.f32 %v1150_v33, %v909_v6 }
 0x204   :  { %v3224_v44 = vadd.f32 %v1152_v34, %v986_v7 }
 0x205   :  { %v913_v35 = vpop.f32.mrb[18].mxu0 }
 0x206   :  { %v990_v36 = vpop.f32.mrb[18].mxu1  ;;  %v3210_v0 = vadd.f32 %v1157_v10, %v913_v35  ;;  %v915_v38 = vpop.f32.mrb[19].mxu0 }
 0x207   :  { %v3212_v37 = vadd.f32 %v1159_v29, %v990_v36  ;;  %v992_v39 = vpop.f32.mrb[19].mxu1  ;;  %v3218_v41 = vadd.f32 %v1158_v31, %v915_v38 }
 0x208   :  { %v3220_v42 = vadd.f32 %v1160_v32, %v992_v39  ;;  %v1182_v45 = vsel %vm1181_vm3, %v3210_v0, -inf }
 0x209   :  { %v1198_v46 = vsel %vm1181_vm3, %v3212_v37, -inf  ;;  %v1183_v47 = vmax.f32 %v3214_v40, %v1182_v45  ;;  %v1190_v49 = vsel %vm1181_vm3, %v3218_v41, -inf  ;;  %v1061_v51 = vpop.f32.mrb[20].mxu0 }
 0x20a   :  { %v1199_v48 = vmax.f32 %v3216_v18, %v1198_v46  ;;  %v1206_v50 = vsel %vm1181_vm3, %v3220_v42, -inf  ;;  %v1138_v53 = vpop.f32.mrb[20].mxu1  ;;  %v1191_v25 = vmax.f32 %v3222_v43, %v1190_v49  ;;  %v1063_v57 = vpop.f32.mrb[21].mxu0  ;;  %v3238_v12 = vadd.f32 %v1153_v52, %v1061_v51 }
 0x20b   :  { %v1207_v56 = vmax.f32 %v3224_v44, %v1206_v50  ;;  %v1140_v59 = vpop.f32.mrb[21].mxu1  ;;  %v1184_v61 = vrot.slane %v1183_v47, 4  ;;  %v3240_v13 = vadd.f32 %v1155_v54, %v1138_v53  ;;  %v3242_v17 = vadd.f32 %v1154_v58, %v1063_v57 }
 0x20c   :  { %v1200_v62 = vrot.slane %v1199_v48, 4  ;;  %v1192_v8 = vrot.slane %v1191_v25, 4  ;;  %v3244_v19 = vadd.f32 %v1156_v60, %v1140_v59 }
 0x20d   :  { %v1208_v11 = vrot.slane %v1207_v56, 4  ;;  %v1185_v27 = vmax.f32 %v1183_v47, %v1184_v61  ;;  %v1067_v20 = vpop.f32.mrb[22].mxu0 }
 0x20e   :  { %v1201_v16 = vmax.f32 %v1199_v48, %v1200_v62  ;;  %v1144_v21 = vpop.f32.mrb[22].mxu1  ;;  %v1193_v22 = vmax.f32 %v1191_v25, %v1192_v8  ;;  %v3246_v24 = vadd.f32 %v1161_v63, %v1067_v20  ;;  %v1069_v28 = vpop.f32.mrb[23].mxu0 }
 0x20f   :  { %v1209_v23 = vmax.f32 %v1207_v56, %v1208_v11  ;;  %v3248_v26 = vadd.f32 %v1163_v1, %v1144_v21  ;;  %v1146_v55 = vpop.f32.mrb[23].mxu1  ;;  %v1186_v2 = vrot.slane %v1185_v27, 2  ;;  %v3250_v4 = vadd.f32 %v1162_v14, %v1069_v28 }
 0x210   :  { %v1202_v3 = vrot.slane %v1201_v16, 2  ;;  %v3252_v5 = vadd.f32 %v1164_v15, %v1146_v55  ;;  %v1194_v6 = vrot.slane %v1193_v22, 2  ;;  %v1214_v9 = vsel %vm1181_vm3, %v3246_v24, -inf }
 0x211   :  { %v1210_v7 = vrot.slane %v1209_v23, 2  ;;  %v1230_v10 = vsel %vm1181_vm3, %v3248_v26, -inf  ;;  %v1187_v29 = vmax.f32 %v1185_v27, %v1186_v2  ;;  %v1215_v31 = vmax.f32 %v3238_v12, %v1214_v9 }
 0x212   :  { %v1203_v30 = vmax.f32 %v1201_v16, %v1202_v3  ;;  %v1231_v32 = vmax.f32 %v3240_v13, %v1230_v10  ;;  %v1195_v33 = vmax.f32 %v1193_v22, %v1194_v6  ;;  %v1222_v35 = vsel %vm1181_vm3, %v3250_v4, -inf }
 0x213   :  { %v1211_v34 = vmax.f32 %v1209_v23, %v1210_v7  ;;  %v1238_v36 = vsel %vm1181_vm3, %v3252_v5, -inf  ;;  %v1188_v38 = vrot.slane %v1187_v29, 1  ;;  %v1216_v45 = vrot.slane %v1215_v31, 4 }
 0x214   :  { %v1204_v39 = vrot.slane %v1203_v30, 1  ;;  %v1232_v46 = vrot.slane %v1231_v32, 4  ;;  %v1196_v47 = vrot.slane %v1195_v33, 1  ;;  %v1223_v49 = vmax.f32 %v3242_v17, %v1222_v35 }
 0x215   :  { %v1212_v48 = vrot.slane %v1211_v34, 1  ;;  %v1239_v50 = vmax.f32 %v3244_v19, %v1238_v36  ;;  %v3266_v51 = vmax.f32 %v1187_v29, %v1188_v38  ;;  %v1217_v53 = vmax.f32 %v1215_v31, %v1216_v45 }
 0x216   :  { %v3268_v52 = vmax.f32 %v1203_v30, %v1204_v39  ;;  %v1233_v54 = vmax.f32 %v1231_v32, %v1232_v46  ;;  %v3270_v25 = vmax.f32 %v1195_v33, %v1196_v47  ;;  %v1224_v57 = vrot.slane %v1223_v49, 4 }
 0x217   :  { %v3272_v56 = vmax.f32 %v1211_v34, %v1212_v48  ;;  %v1240_v58 = vrot.slane %v1239_v50, 4  ;;  %v1246_v59 = vsub.f32 %v3214_v40, %v3266_v51  ;;  %v1254_v60 = vsub.f32 %v3210_v0, %v3266_v51 }
 0x218   :  { %v1248_v61 = vsub.f32 %v3216_v18, %v3268_v52  ;;  %v1256_v62 = vsub.f32 %v3212_v37, %v3268_v52  ;;  %v1247_v63 = vsub.f32 %v3222_v43, %v3270_v25  ;;  %v1255_v1 = vsub.f32 %v3218_v41, %v3270_v25 }
 0x219   :  { %v1249_v8 = vsub.f32 %v3224_v44, %v3272_v56  ;;  %v1257_v11 = vsub.f32 %v3220_v42, %v3272_v56  ;;  %v1262_v14 = vmul.f32 1.442695, %v1246_v59  ;;  %v1278_v15 = vmul.f32 1.442695, %v1254_v60 }
 0x21a   :  { %v1266_v27 = vmul.f32 1.442695, %v1248_v61  ;;  %v1225_v16 = vmax.f32 %v1223_v49, %v1224_v57  ;;  %v1282_v20 = vmul.f32 1.442695, %v1256_v62  ;;  %v1241_v21 = vmax.f32 %v1239_v50, %v1240_v58 }
 0x21b   :  { %2743 = vpow2.f32 %v1262_v14  ;;  %v1264_v22 = vmul.f32 1.442695, %v1247_v63  ;;  %v1280_v23 = vmul.f32 1.442695, %v1255_v1  ;;  %v1218_v28 = vrot.slane %v1217_v53, 2 }
 0x21c   :  { %2745 = vpow2.f32 %v1278_v15  ;;  %v1234_v55 = vrot.slane %v1233_v54, 2  ;;  %v1226_v2 = vrot.slane %v1225_v16, 2  ;;  %v1242_v3 = vrot.slane %v1241_v21, 2 }
 0x21d   :  { %2747 = vpow2.f32 %v1266_v27  ;;  %v1268_v6 = vmul.f32 1.442695, %v1249_v8  ;;  %v1284_v7 = vmul.f32 1.442695, %v1257_v11  ;;  %v1219_v9 = vmax.f32 %v1217_v53, %v1218_v28 }
 0x21e   :  { %2749 = vpow2.f32 %v1282_v20  ;;  %v1235_v10 = vmax.f32 %v1233_v54, %v1234_v55  ;;  %v1227_v29 = vmax.f32 %v1225_v16, %v1226_v2  ;;  %v1243_v30 = vmax.f32 %v1241_v21, %v1242_v3 }
 0x21f   :  { %2751 = vpow2.f32 %v1264_v22  ;;  %v1220_v31 = vrot.slane %v1219_v9, 1 }
 0x220   :  { %2753 = vpow2.f32 %v1280_v23  ;;  %v1236_v32 = vrot.slane %v1235_v10, 1  ;;  %v1228_v33 = vrot.slane %v1227_v29, 1  ;;  %v1244_v34 = vrot.slane %v1243_v30, 1 }
 0x221   :  { %2755 = vpow2.f32 %v1268_v6  ;;  %v3290_v35 = vmax.f32 %v1219_v9, %v1220_v31 }
 0x222   :  { %2757 = vpow2.f32 %v1284_v7  ;;  %v3292_v36 = vmax.f32 %v1235_v10, %v1236_v32  ;;  %v3294_v38 = vmax.f32 %v1227_v29, %v1228_v33  ;;  %v3296_v39 = vmax.f32 %v1243_v30, %v1244_v34 }
 0x223   :  { %v1250_v45 = vsub.f32 %v3238_v12, %v3290_v35  ;;  %v1258_v46 = vsub.f32 %v3246_v24, %v3290_v35 }
 0x224   :  { %v1252_v47 = vsub.f32 %v3240_v13, %v3292_v36  ;;  %v1260_v48 = vsub.f32 %v3248_v26, %v3292_v36  ;;  %v1251_v49 = vsub.f32 %v3242_v17, %v3294_v38  ;;  %v1259_v50 = vsub.f32 %v3250_v4, %v3294_v38 }
 0x225   :  { %v2744_v53 = vpop.eup %2743  ;;  %v1270_v54 = vmul.f32 1.442695, %v1250_v45  ;;  %v1286_v57 = vmul.f32 1.442695, %v1258_v46  ;;  %v1253_v58 = vsub.f32 %v3244_v19, %v3296_v39  ;;  %v1261_v8 = vsub.f32 %v3252_v5, %v3296_v39 }
 0x226   :  { %v2746_v59 = vpop.eup %2745  ;;  %v1274_v60 = vmul.f32 1.442695, %v1252_v47  ;;  %v1290_v61 = vmul.f32 1.442695, %v1260_v48  ;;  %v1272_v1 = vmul.f32 1.442695, %v1251_v49 }
 0x227   :  { %v2748_v62 = vpop.eup %2747  ;;  %v1294_v63 = vsel %vm1181_vm3, %v2746_v59, 0.0  ;;  %2759 = vpow2.f32 %v1270_v54  ;;  %v1288_v15 = vmul.f32 1.442695, %v1259_v50  ;;  %v1276_v20 = vmul.f32 1.442695, %v1253_v58 }
 0x228   :  { %v2750_v11 = vpop.eup %2749  ;;  %v1295_v14 = vadd.f32 %v2744_v53, %v1294_v63  ;;  %2761 = vpow2.f32 %v1286_v57  ;;  %v1292_v2 = vmul.f32 1.442695, %v1261_v8 }
 0x229   :  { %v2752_v27 = vpop.eup %2751  ;;  %v1310_v16 = vsel %vm1181_vm3, %v2750_v11, 0.0  ;;  %2763 = vpow2.f32 %v1274_v60 }
 0x22a   :  { %v2754_v21 = vpop.eup %2753  ;;  %v1296_v22 = vrot.slane %v1295_v14, 4  ;;  %v1311_v23 = vadd.f32 %v2748_v62, %v1310_v16  ;;  %2765 = vpow2.f32 %v1290_v61 }
 0x22b   :  { %v2756_v28 = vpop.eup %2755  ;;  %v1302_v55 = vsel %vm1181_vm3, %v2754_v21, 0.0  ;;  %2767 = vpow2.f32 %v1272_v1 }
 0x22c   :  { %v2758_v3 = vpop.eup %2757  ;;  %v1297_v6 = vadd.f32 %v1296_v22, %v1295_v14  ;;  %v1312_v7 = vrot.slane %v1311_v23, 4  ;;  %v1303_v9 = vadd.f32 %v2752_v27, %v1302_v55  ;;  %2769 = vpow2.f32 %v1288_v15 }
 0x22d   :  { %v1318_v10 = vsel %vm1181_vm3, %v2758_v3, 0.0  ;;  %2771 = vpow2.f32 %v1276_v20  ;;  %v1400_v14 = vlaneseq }
 0x22e   :  { %v1298_v29 = vrot.slane %v1297_v6, 2  ;;  %v1313_v30 = vadd.f32 %v1312_v7, %v1311_v23  ;;  %v1304_v31 = vrot.slane %v1303_v9, 4  ;;  %v1319_v32 = vadd.f32 %v2756_v28, %v1318_v10 }
 0x22f   :  { %2773 = vpow2.f32 %v1292_v2  ;;  %v3322_v10 = vshrl.u32 %v1400_v14, 7 }
 0x230   :  { %v1299_v33 = vadd.f32 %v1298_v29, %v1297_v6  ;;  %v1314_v34 = vrot.slane %v1313_v30, 2  ;;  %v1305_v45 = vadd.f32 %v1304_v31, %v1303_v9  ;;  %v1320_v46 = vrot.slane %v1319_v32, 4 }
 0x231   :  { %v2760_v47 = vpop.eup %2759 }
 0x232   :  { %v2762_v48 = vpop.eup %2761  ;;  %v1300_v49 = vrot.slane %v1299_v33, 1  ;;  %v1315_v50 = vadd.f32 %v1314_v34, %v1313_v30  ;;  %v1306_v53 = vrot.slane %v1305_v45, 2  ;;  %v1321_v54 = vadd.f32 %v1320_v46, %v1319_v32 }
 0x233   :  { %v2764_v57 = vpop.eup %2763  ;;  %v1326_v58 = vsel %vm1181_vm3, %v2762_v48, 0.0 }
 0x234   :  { %v2766_v59 = vpop.eup %2765  ;;  %v1301_v60 = vadd.f32 %v1300_v49, %v1299_v33  ;;  %v1316_v61 = vrot.slane %v1315_v50, 1  ;;  %v1307_v62 = vadd.f32 %v1306_v53, %v1305_v45  ;;  %v1322_v63 = vrot.slane %v1321_v54, 2 }
 0x235   :  { %v2768_v1 = vpop.eup %2767  ;;  %v1327_v8 = vadd.f32 %v2760_v47, %v1326_v58  ;;  %v1342_v11 = vsel %vm1181_vm3, %v2766_v59, 0.0  ;;  %v3329_v58 = vld [vmem:[%s4045_s1] sm:$0xff]  ;;  %s2918_s1 = smov 17  }
 0x236   :  { %v2770_v15 = vpop.eup %2769  ;;  %2775 = vlog2.f32 %v1301_v60  ;;  %v1317_v27 = vadd.f32 %v1316_v61, %v1315_v50  ;;  %v1308_v16 = vrot.slane %v1307_v62, 1  ;;  %v1323_v20 = vadd.f32 %v1322_v63, %v1321_v54 }
 0x237   :  { %v2772_v21 = vpop.eup %2771  ;;  %v1328_v22 = vrot.slane %v1327_v8, 4  ;;  %v1343_v23 = vadd.f32 %v2764_v57, %v1342_v11  ;;  %v1334_v28 = vsel %vm1181_vm3, %v2770_v15, 0.0  ;;  %v1402_v50 = vsub.s32 0, %v3322_v10 }
 0x238   :  { %2777 = vlog2.f32 %v1317_v27  ;;  %v1309_v55 = vadd.f32 %v1308_v16, %v1307_v62  ;;  %v1324_v2 = vrot.slane %v1323_v20, 1  ;;  %v1335_v3 = vadd.f32 %v2768_v1, %v1334_v28 }
 0x239   :  { %v2774_v6 = vpop.eup %2773  ;;  %v1329_v7 = vadd.f32 %v1328_v22, %v1327_v8  ;;  %v1344_v9 = vrot.slane %v1343_v23, 4  ;;  %v1406_v61 = vsub.s32 1, %v3322_v10  ;;  %v1410_v62 = vsub.s32 2, %v3322_v10 }
 0x23a   :  { %2779 = vlog2.f32 %v1309_v55  ;;  %v1325_v29 = vadd.f32 %v1324_v2, %v1323_v20  ;;  %v1336_v30 = vrot.slane %v1335_v3, 4  ;;  %v1350_v31 = vsel %vm1181_vm3, %v2774_v6, 0.0 }
 0x23b   :  { %v1330_v32 = vrot.slane %v1329_v7, 2  ;;  %v1345_v33 = vadd.f32 %v1344_v9, %v1343_v23  ;;  %v1351_v34 = vadd.f32 %v2772_v21, %v1350_v31  ;;  %v1403_v16 = vrot.slane %v3329_v58, %v1402_v50  ;;  %v1456_v50 = vld [vmem:[#allocation6] sm:$0xff] }
 0x23c   :  { %2781 = vlog2.f32 %v1325_v29  ;;  %v1337_v45 = vadd.f32 %v1336_v30, %v1335_v3  ;;  %v2917_v20 = vmov 1966171168   ;;  %v1414_v22 = vsub.s32 3, %v3322_v10 }
 0x23d   :  { %v1331_v46 = vadd.f32 %v1330_v32, %v1329_v7  ;;  %v1346_v47 = vrot.slane %v1345_v33, 2  ;;  %v1352_v48 = vrot.slane %v1351_v34, 4  ;;  %v1528_v21 = vunpack.c.l.s4 %v2917_v20 }
 0x23e   :  { %v1338_v49 = vrot.slane %v1337_v45, 2  ;;  %v1407_v7 = vrot.slane %v3329_v58, %v1406_v61  ;;  %v1411_v9 = vrot.slane %v3329_v58, %v1410_v62  ;;  %v1458_v61 = vld [vmem:[#allocation6 + $0x10] sm:$0xff]  ;;  %v1465_v62 = vld [vmem:[#allocation6 + $0x48] sm:$0x1] }
 0x23f   :  { %v1332_v53 = vrot.slane %v1331_v46, 1  ;;  %v1347_v54 = vadd.f32 %v1346_v47, %v1345_v33  ;;  %v1353_v57 = vadd.f32 %v1352_v48, %v1351_v34  ;;  %v1529_v34 = vunpack.c.0.s8 %v1528_v21 }
 0x240   :  { %v2776_v59 = vpop.eup %2775  ;;  %v1339_v60 = vadd.f32 %v1338_v49, %v1337_v45  ;;  %v1415_v45 = vrot.slane %v3329_v58, %v1414_v22 }
 0x241   :  { %v1359_v63 = vmul.f32 0.6931472, %v2776_v59  ;;  %v1333_v1 = vadd.f32 %v1332_v53, %v1331_v46  ;;  %v1348_v8 = vrot.slane %v1347_v54, 1  ;;  %v1354_v11 = vrot.slane %v1353_v57, 2 }
 0x242   :  { %v2778_v15 = vpop.eup %2777  ;;  %v1340_v27 = vrot.slane %v1339_v60, 1 }
 0x243   :  { %v1374_v23 = vadd.f32 %v1359_v63, %v3266_v51  ;;  %v1363_v28 = vmul.f32 0.6931472, %v2778_v15  ;;  %2783 = vlog2.f32 %v1333_v1  ;;  %v1349_v55 = vadd.f32 %v1348_v8, %v1347_v54 }
 0x244   :  { %v2780_v2 = vpop.eup %2779  ;;  %v1341_v3 = vadd.f32 %v1340_v27, %v1339_v60  ;;  %v1355_v6 = vadd.f32 %v1354_v11, %v1353_v57 }
 0x245   :  { %v1382_v29 = vsub.f32 %v3214_v40, %v1374_v23  ;;  %v1390_v30 = vsub.f32 %v3210_v0, %v1374_v23  ;;  %v1376_v31 = vadd.f32 %v1363_v28, %v3268_v52  ;;  %v1361_v32 = vmul.f32 0.6931472, %v2780_v2  ;;  %v1464_v40 = vld [vmem:[#allocation6 + $0x40] sm:$0x1]  ;;  %v1467_v28 = vld [vmem:[#allocation6 + $0x58] sm:$0x1] }
 0x246   :  { %v2782_v33 = vpop.eup %2781  ;;  %2785 = vlog2.f32 %v1349_v55  ;;  %v1356_v51 = vrot.slane %v1355_v6, 1 }
 0x247   :  { %v1384_v46 = vsub.f32 %v3216_v18, %v1376_v31  ;;  %v1392_v47 = vsub.f32 %v3212_v37, %v1376_v31  ;;  %v1375_v48 = vadd.f32 %v1361_v32, %v3270_v25  ;;  %v1365_v49 = vmul.f32 0.6931472, %v2782_v33  ;;  %v1457_v25 = vld [vmem:[#allocation6 + $0x8] sm:$0xff] }
 0x248   :  { %2787 = vlog2.f32 %v1341_v3  ;;  %v1357_v0 = vadd.f32 %v1356_v51, %v1355_v6  ;;  %v1448_v53 = vadd.f32 %v1403_v16, %v1390_v30  ;;  %v1440_v52 = vadd.f32 %v1403_v16, %v1382_v29 }
 0x249   :  { %v1383_v54 = vsub.f32 %v3222_v43, %v1375_v48  ;;  %v1391_v57 = vsub.f32 %v3218_v41, %v1375_v48  ;;  %v1377_v59 = vadd.f32 %v1365_v49, %v3272_v56  ;;  %v1442_v60 = vadd.f32 %v1411_v9, %v1384_v46  ;;  %v1466_v43 = vld [vmem:[#allocation6 + $0x50] sm:$0x1]  ;;  %v1459_v56 = vld [vmem:[#allocation6 + $0x18] sm:$0xff] }
 0x24a   :  { %2789 = vlog2.f32 %v1357_v0  ;;  %v1480_v18 = vadd.f32 %v1464_v40, %v1448_v53  ;;  %v3348_v37 = vadd.f32 %v1456_v50, %v1440_v52  ;;  %v1450_v63 = vadd.f32 %v1411_v9, %v1392_v47 }
 0x24b   :  { %v1385_v1 = vsub.f32 %v3224_v44, %v1377_v59  ;;  %v1393_v8 = vsub.f32 %v3220_v42, %v1377_v59  ;;  %v1449_v11 = vadd.f32 %v1407_v7, %v1391_v57  ;;  %v1441_v15 = vadd.f32 %v1407_v7, %v1383_v54  ;;  %v1461_v59 = vld [vmem:[#allocation6 + $0x28] sm:$0xff] }
 0x24c   :  { %2248 = vrot.lane.b32.xlu0 %v1480_v18, %s2918_s1  ;;  %v3353_v41 = vadd.f32 %v1458_v61, %v1442_v60  ;;  %v3358_v44 = vsub.s32 %v1529_v34, %v3322_v10  ;;  %v1482_v42 = vadd.f32 %v1466_v43, %v1450_v63  ;;  %v1418_v6 = vsub.s32 4, %v3322_v10  ;;  %v1463_v18 = vld [vmem:[#allocation6 + $0x38] sm:$0xff] }
 0x24d   :  { %v2784_v27 = vpop.eup %2783  ;;  %v1481_v16 = vadd.f32 %v1465_v62, %v1449_v11  ;;  %v3355_v20 = vadd.f32 %v1457_v25, %v1441_v15  ;;  %v1443_v21 = vadd.f32 %v1415_v45, %v1385_v1  ;;  %v1451_v22 = vadd.f32 %v1415_v45, %v1393_v8 }
 0x24e   :  { %v1367_v23 = vmul.f32 0.6931472, %v2784_v27  ;;  %v1422_v33 = vsub.s32 5, %v3322_v10  ;;  %v1426_v51 = vsub.s32 6, %v3322_v10  ;;  %v3389_v50 = vrot.slane %v3329_v58, %v1418_v6 }
 0x24f   :  { %2250 = vrot.lane.b32.xlu1 %v1481_v16, %s2918_s1  ;;  %v1889_v55 = vcombine.high %v3348_v37, %v3355_v20  ;;  %v3363_v2 = vadd.f32 %v1459_v56, %v1443_v21  ;;  %v1483_v29 = vadd.f32 %v1467_v28, %v1451_v22  ;;  %v1584_v63 = vrot.slane %v3355_v20, 1 }
 0x250   :  { %v2786_v3 = vpop.eup %2785  ;;  %2252 = vrot.lane.b32.xlu0 %v1482_v42, %s2918_s1  ;;  %v3368_v7 = vadd.f32 %v1367_v23, %v3290_v35  ;;  %v1430_v35 = vsub.s32 7, %v3322_v10  ;;  %v3394_v10 = vrot.slane %v3329_v58, %v1422_v33  ;;  %v3397_v53 = vrot.slane %v3329_v58, %v1426_v51 }
 0x251   :  { %v1371_v9 = vmul.f32 0.6931472, %v2786_v3  ;;  %v1890_v30 = vcombine.high %v3353_v41, %v3363_v2  ;;  %v1899_v32 = vrot.slane %v1889_v55, %v3358_v44  ;;  %v1585_v8 = vrot.slane %v3353_v41, 1 }
 0x252   :  { %v2788_v31 = vpop.eup %2787  ;;  %v1386_v48 = vsub.f32 %v3238_v12, %v3368_v7  ;;  %v3407_v52 = vrot.slane %v3329_v58, %v1430_v35  ;;  %v1586_v56 = vrot.slane %v3363_v2, 1  ;;  %v1685_v16 = vrot.slane %v3348_v37, 2 }
 0x253   :  { %v3376_v34 = vadd.f32 %v1371_v9, %v3292_v36  ;;  %v1369_v45 = vmul.f32 0.6931472, %v2788_v31  ;;  %v1906_v46 = vrot.slane %v1890_v30, %v3358_v44  ;;  %2254 = vrot.lane.b32.xlu1 %v1483_v29, %s2918_s1  ;;  %v1686_v23 = vrot.slane %v3355_v20, 2 }
 0x254   :  { %v2790_v47 = vpop.eup %2789  ;;  %1488 = vrot.lane.b32.xlu0 %v3348_v37, %s2919_s12  ;;  %v1444_v57 = vadd.f32 %v3389_v50, %v1386_v48  ;;  %v1687_v28 = vrot.slane %v3353_v41, 2  ;;  %v1688_v3 = vrot.slane %v3363_v2, 2  ;;  %v1787_v6 = vrot.slane %v3348_v37, 3 }
 0x255   :  { %v3386_v49 = vadd.f32 %v1369_v45, %v3294_v38  ;;  %v1373_v36 = vmul.f32 0.6931472, %v2790_v47  ;;  %v1388_v40 = vsub.f32 %v3240_v13, %v3376_v34  ;;  %v1921_v0 = vcombine.low %v1899_v32, %v1906_v46  ;;  %v1460_v13 = vld [vmem:[#allocation6 + $0x20] sm:$0xff] }
 0x256   :  { %v3419_v58 = vadd.f32 %v1460_v13, %v1444_v57  ;;  %v1788_v9 = vrot.slane %v3355_v20, 3  ;;  %v1789_v29 = vrot.slane %v3353_v41, 3  ;;  %v1790_v30 = vrot.slane %v3363_v2, 3 }
 0x257   :  { %v1387_v12 = vsub.f32 %v3242_v17, %v3386_v49  ;;  %v3402_v38 = vadd.f32 %v1373_v36, %v3296_v39  ;;  %1490 = vrot.lane.b32.xlu1 %v3355_v20, %s2919_s12  ;;  %v1462_v17 = vld [vmem:[#allocation6 + $0x30] sm:$0xff]  ;;  %v1583_v39 = vrot.slane %v3348_v37, 1  ;;  %v1446_v61 = vadd.f32 %v3397_v53, %v1388_v40 }
 0x258   :  { %1492 = vrot.lane.b32.xlu0 %v3353_v41, %s2919_s12  ;;  %v1929_v22 = vrot.slane %v1921_v0, %v3358_v44  ;;  %v1942_v31 = vrot.slane %v3348_v37, 5  ;;  %v1943_v32 = vrot.slane %v3355_v20, 5  ;;  %v1944_v33 = vrot.slane %v3353_v41, 5 }
 0x259   :  { %v1389_v54 = vsub.f32 %v3244_v19, %v3402_v38  ;;  %v1445_v60 = vadd.f32 %v3394_v10, %v1387_v12  ;;  %v3425_v62 = vadd.f32 %v1462_v17, %v1446_v61  ;;  %v1945_v51 = vrot.slane %v3363_v2, 5 }
 0x25a   :  { %v2044_v45 = vrot.slane %v3348_v37, 6  ;;  %v2045_v46 = vrot.slane %v3355_v20, 6  ;;  %v2046_v35 = vrot.slane %v3353_v41, 6  ;;  %v2047_v47 = vrot.slane %v3363_v2, 6 }
 0x25b   :  { %1494 = vrot.lane.b32.xlu1 %v3363_v2, %s2919_s12  ;;  %v1447_v25 = vadd.f32 %v3407_v52, %v1389_v54  ;;  %v3423_v19 = vadd.f32 %v1461_v59, %v1445_v60  ;;  %v1394_v48 = vsub.f32 %v3246_v24, %v3368_v7  ;;  %v2146_v36 = vrot.slane %v3348_v37, 7  ;;  %v1468_v24 = vld [vmem:[#allocation6 + $0x60] sm:$0x1]  ;;  %v1471_v59 = vld [vmem:[#allocation6 + $0x78] sm:$0x1] }
 0x25c   :  { %1599 = vrot.lane.b32.xlu0 %v1583_v39, %s2920_s13  ;;  %v1395_v40 = vsub.f32 %v3250_v4, %v3386_v49  ;;  %v2147_v0 = vrot.slane %v3355_v20, 7  ;;  %v1396_v12 = vsub.f32 %v3248_v26, %v3376_v34  ;;  %v2148_v13 = vrot.slane %v3353_v41, 7  ;;  %v1469_v49 = vld [vmem:[#allocation6 + $0x68] sm:$0x1]  ;;  %v1470_v41 = vld [vmem:[#allocation6 + $0x70] sm:$0x1] }
 0x25d   :  { %v3428_v1 = vadd.f32 %v1463_v18, %v1447_v25  ;;  %v1891_v11 = vcombine.high %v3419_v58, %v3423_v19  ;;  %v1452_v54 = vadd.f32 %v3389_v50, %v1394_v48  ;;  %v1397_v37 = vsub.f32 %v3252_v5, %v3402_v38 }
 0x25e   :  { %v2149_v7 = vrot.slane %v3363_v2, 7  ;;  %v1453_v4 = vadd.f32 %v3394_v10, %v1395_v40  ;;  %v1454_v26 = vadd.f32 %v3397_v53, %v1396_v12  ;;  %v1587_v2 = vrot.slane %v3419_v58, 1 }
 0x25f   :  { %1601 = vrot.lane.b32.xlu1 %v1584_v63, %s2920_s13  ;;  %v1892_v15 = vcombine.high %v3425_v62, %v3428_v1  ;;  %v1913_v43 = vrot.slane %v1891_v11, %v3358_v44  ;;  %v1484_v20 = vadd.f32 %v1468_v24, %v1452_v54  ;;  %v1455_v50 = vadd.f32 %v3407_v52, %v1397_v37 }
 0x260   :  { %1603 = vrot.lane.b32.xlu0 %v1585_v8, %s2920_s13  ;;  %v1485_v34 = vadd.f32 %v1469_v49, %v1453_v4  ;;  %v1486_v57 = vadd.f32 %v1470_v41, %v1454_v26  ;;  %v1588_v10 = vrot.slane %v3423_v19, 1  ;;  %v1589_v53 = vrot.slane %v3425_v62, 1 }
 0x261   :  { %v1920_v27 = vrot.slane %v1892_v15, %v3358_v44  ;;  %v1487_v5 = vadd.f32 %v1471_v59, %v1455_v50  ;;  %v1590_v38 = vrot.slane %v3428_v1, 1  ;;  %v1689_v52 = vrot.slane %v3419_v58, 2 }
 0x262   :  { %v1690_v17 = vrot.slane %v3423_v19, 2  ;;  %v1691_v39 = vrot.slane %v3425_v62, 2  ;;  %v1692_v60 = vrot.slane %v3428_v1, 2  ;;  %v1791_v61 = vrot.slane %v3419_v58, 3 }
 0x263   :  { %1605 = vrot.lane.b32.xlu1 %v1586_v56, %s2920_s13  ;;  %v1922_v21 = vcombine.low %v1913_v43, %v1920_v27  ;;  %v1792_v18 = vrot.slane %v3423_v19, 3  ;;  %v1793_v25 = vrot.slane %v3425_v62, 3  ;;  %v1794_v63 = vrot.slane %v3428_v1, 3 }
 0x264   :  { %1701 = vrot.lane.b32.xlu0 %v1685_v16, %s2921_s14  ;;  %v1946_v8 = vrot.slane %v3419_v58, 5  ;;  %v1947_v11 = vrot.slane %v3423_v19, 5  ;;  %v1948_v15 = vrot.slane %v3425_v62, 5  ;;  %v1949_v43 = vrot.slane %v3428_v1, 5 }
 0x265   :  { %v1936_v42 = vrot.slane %v1922_v21, %v3358_v44  ;;  %v2048_v56 = vrot.slane %v3419_v58, 6  ;;  %v2049_v27 = vrot.slane %v3423_v19, 6  ;;  %v3545_v21 = vand.u32 127, %v1400_v14 }
 0x267   :  { %1703 = vrot.lane.b32.xlu1 %v1686_v23, %s2921_s14  ;;  %v1937_v55 = vcombine.low %v1929_v22, %v1936_v42  ;;  %v2050_v22 = vrot.slane %v3425_v62, 6  ;;  %v2051_v42 = vrot.slane %v3428_v1, 6  ;;  %vm2264_vm4 = vcmp.lt.s32.totalorder %v3545_v21, 17 }
 0x268   :  { %1705 = vrot.lane.b32.xlu0 %v1687_v28, %s2921_s14  ;;  %vm1506_vm5 = vcmp.lt.s32.totalorder %v3545_v21, 111  ;;  %vm1615_vm6 = vcmp.lt.s32.totalorder %v3545_v21, 112  ;;  %vm1717_vm7 = vcmp.lt.s32.totalorder %v3545_v21, 113  ;;  %vm1819_vm8 = vcmp.lt.s32.totalorder %v3545_v21, 127 }
 0x269   :  { %1940 = vst [vmem:[#allocation2 + $0x4] ss:$8 sm:$0xf] %v1937_v55  ;;  %1941 = vst [vmem:[#allocation2 + $0x4] ss:$8 sm:$0xf0] %v1937_v55 }
 0x26a   :  { %v2150_v55 = vrot.slane %v3419_v58, 7  ;;  %vm1974_vm9 = vcmp.lt.s32.totalorder %v3545_v21, 1  ;;  %vm2076_vm10 = vcmp.lt.s32.totalorder %v3545_v21, 15  ;;  %vm2178_vm11 = vcmp.lt.s32.totalorder %v3545_v21, 16 }
 0x26b   :  { %1707 = vrot.lane.b32.xlu1 %v1688_v3, %s2921_s14 }
 0x26c   :  { %1803 = vrot.lane.b32.xlu0 %v1787_v6, %s2922_s15  ;;  %v2151_v6 = vrot.slane %v3423_v19, 7 }
 0x26f   :  { %1805 = vrot.lane.b32.xlu1 %v1788_v9, %s2922_s15 }
 0x270   :  { %1807 = vrot.lane.b32.xlu0 %v1789_v29, %s2922_s15 }
 0x273   :  { %1809 = vrot.lane.b32.xlu1 %v1790_v30, %s2922_s15 }
 0x274   :  { %1958 = vrot.lane.b32.xlu0 %v1942_v31, %s2923_s16 }
 0x277   :  { %1960 = vrot.lane.b32.xlu1 %v1943_v32, %s2923_s16 }
 0x278   :  { %1962 = vrot.lane.b32.xlu0 %v1944_v33, %s2923_s16 }
 0x27b   :  { %1964 = vrot.lane.b32.xlu1 %v1945_v51, %s2923_s16 }
 0x27c   :  { %2060 = vrot.lane.b32.xlu0 %v2044_v45, %s2924_s0 }
 0x27f   :  { %2062 = vrot.lane.b32.xlu1 %v2045_v46, %s2924_s0 }
 0x280   :  { %2064 = vrot.lane.b32.xlu0 %v2046_v35, %s2924_s0 }
 0x283   :  { %2066 = vrot.lane.b32.xlu1 %v2047_v47, %s2924_s0 }
 0x284   :  { %2162 = vrot.lane.b32.xlu0 %v2146_v36, %s2925_s17 }
 0x287   :  { %2164 = vrot.lane.b32.xlu1 %v2147_v0, %s2925_s17 }
 0x288   :  { %2166 = vrot.lane.b32.xlu0 %v2148_v13, %s2925_s17 }
 0x28b   :  { %2168 = vrot.lane.b32.xlu1 %v2149_v7, %s2925_s17 }
 0x28c   :  { %2256 = vrot.lane.b32.xlu0 %v1484_v20, %s2918_s1 }
 0x28f   :  { %2258 = vrot.lane.b32.xlu1 %v1485_v34, %s2918_s1 }
 0x290   :  { %2260 = vrot.lane.b32.xlu0 %v1486_v57, %s2918_s1 }
 0x293   :  { %2262 = vrot.lane.b32.xlu1 %v1487_v5, %s2918_s1 }
 0x294   :  { %1496 = vrot.lane.b32.xlu0 %v3419_v58, %s2919_s12  ;;  %v2152_v58 = vrot.slane %v3425_v62, 7 }
 0x297   :  { %1498 = vrot.lane.b32.xlu1 %v3423_v19, %s2919_s12  ;;  %v2153_v19 = vrot.slane %v3428_v1, 7 }
 0x298   :  { %1500 = vrot.lane.b32.xlu0 %v3425_v62, %s2919_s12 }
 0x29b   :  { %1502 = vrot.lane.b32.xlu1 %v3428_v1, %s2919_s12 }
 0x29c   :  { %1607 = vrot.lane.b32.xlu0 %v1587_v2, %s2920_s13 }
 0x29f   :  { %1609 = vrot.lane.b32.xlu1 %v1588_v10, %s2920_s13 }
 0x2a0   :  { %1611 = vrot.lane.b32.xlu0 %v1589_v53, %s2920_s13 }
 0x2a3   :  { %1613 = vrot.lane.b32.xlu1 %v1590_v38, %s2920_s13 }
 0x2a4   :  { %1709 = vrot.lane.b32.xlu0 %v1689_v52, %s2921_s14 }
 0x2a7   :  { %1711 = vrot.lane.b32.xlu1 %v1690_v17, %s2921_s14 }
 0x2a8   :  { %1713 = vrot.lane.b32.xlu0 %v1691_v39, %s2921_s14 }
 0x2ab   :  { %1715 = vrot.lane.b32.xlu1 %v1692_v60, %s2921_s14 }
 0x2ac   :  { %1811 = vrot.lane.b32.xlu0 %v1791_v61, %s2922_s15 }
 0x2af   :  { %1813 = vrot.lane.b32.xlu1 %v1792_v18, %s2922_s15 }
 0x2b0   :  { %1815 = vrot.lane.b32.xlu0 %v1793_v25, %s2922_s15 }
 0x2b3   :  { %1817 = vrot.lane.b32.xlu1 %v1794_v63, %s2922_s15 }
 0x2b4   :  { %1966 = vrot.lane.b32.xlu0 %v1946_v8, %s2923_s16 }
 0x2b7   :  { %1968 = vrot.lane.b32.xlu1 %v1947_v11, %s2923_s16 }
 0x2b8   :  { %1970 = vrot.lane.b32.xlu0 %v1948_v15, %s2923_s16 }
 0x2bb   :  { %1972 = vrot.lane.b32.xlu1 %v1949_v43, %s2923_s16 }
 0x2bc   :  { %2068 = vrot.lane.b32.xlu0 %v2048_v56, %s2924_s0 }
 0x2be   :  { %v3542_v16 = vpop.permute.xlu0 %2248 }
 0x2bf   :  { %2070 = vrot.lane.b32.xlu1 %v2049_v27, %s2924_s0 }
 0x2c0   :  { %2072 = vrot.lane.b32.xlu0 %v2050_v22, %s2924_s0 }
 0x2c1   :  { %v3550_v23 = vpop.permute.xlu1 %2250 }
 0x2c2   :  { %v2253_v28 = vpop.permute.xlu0 %2252 }
 0x2c3   :  { %2074 = vrot.lane.b32.xlu1 %v2051_v42, %s2924_s0  ;;  %v3559_v14 = vsel %vm2264_vm4, %v3550_v23, %v2253_v28 }
 0x2c4   :  { %2170 = vrot.lane.b32.xlu0 %v2150_v55, %s2925_s17 }
 0x2c5   :  { %v3562_v3 = vpop.permute.xlu1 %2254 }
 0x2c6   :  { %v3568_v9 = vsel %vm2264_vm4, %v2253_v28, %v3562_v3  ;;  %v3570_v29 = vpop.permute.xlu0 %1488 }
 0x2c7   :  { %v2282_v30 = vcombine.low %v3559_v14, %v3568_v9  ;;  %2172 = vrot.lane.b32.xlu1 %v2151_v6, %s2925_s17 }
 0x2c8   :  { %2174 = vrot.lane.b32.xlu0 %v2152_v58, %s2925_s17 }
 0x2c9   :  { %v1491_v31 = vpop.permute.xlu1 %1490 }
 0x2ca   :  { %v1493_v32 = vpop.permute.xlu0 %1492  ;;  %v3582_v33 = vsel %vm1506_vm5, %v3570_v29, %v1491_v31 }
 0x2cb   :  { %2176 = vrot.lane.b32.xlu1 %v2153_v19, %s2925_s17  ;;  %v3587_v62 = vsel %vm1506_vm5, %v1491_v31, %v1493_v32 }
 0x2cc   :  { %v1523_v51 = vcombine.low %v3582_v33, %v3587_v62 }
 0x2cd   :  { %v3591_v45 = vpop.permute.xlu1 %1494 }
 0x2ce   :  { %v3596_v1 = vsel %vm1506_vm5, %v1493_v32, %v3591_v45  ;;  %v3598_v46 = vpop.permute.xlu0 %1599 }
 0x2d1   :  { %v1602_v35 = vpop.permute.xlu1 %1601 }
 0x2d2   :  { %v1604_v47 = vpop.permute.xlu0 %1603  ;;  %v3604_v48 = vsel %vm1615_vm6, %v3598_v46, %v1602_v35 }
 0x2d3   :  { %v3608_v36 = vsel %vm1615_vm6, %v1602_v35, %v1604_v47 }
 0x2d4   :  { %v1632_v40 = vcombine.low %v3604_v48, %v3608_v36 }
 0x2d5   :  { %v3612_v0 = vpop.permute.xlu1 %1605 }
 0x2d6   :  { %v3617_v12 = vsel %vm1615_vm6, %v1604_v47, %v3612_v0  ;;  %v3619_v13 = vpop.permute.xlu0 %1701 }
 0x2d9   :  { %v1704_v54 = vpop.permute.xlu1 %1703 }
 0x2da   :  { %v1706_v24 = vpop.permute.xlu0 %1705  ;;  %v3625_v37 = vsel %vm1717_vm7, %v3619_v13, %v1704_v54 }
 0x2db   :  { %v3629_v7 = vsel %vm1717_vm7, %v1704_v54, %v1706_v24 }
 0x2dc   :  { %v1734_v4 = vcombine.low %v3625_v37, %v3629_v7 }
 0x2dd   :  { %v3633_v20 = vpop.permute.xlu1 %1707 }
 0x2de   :  { %v3638_v49 = vsel %vm1717_vm7, %v1706_v24, %v3633_v20  ;;  %v3640_v26 = vpop.permute.xlu0 %1803  ;;  %v2271_v24 = vsel %vm2264_vm4, %v3542_v16, %v3550_v23  ;;  %v2298_v23 = vrot.slane %v2282_v30, %v3358_v44 }
 0x2e1   :  { %v1806_v41 = vpop.permute.xlu1 %1805 }
 0x2e2   :  { %v1808_v34 = vpop.permute.xlu0 %1807  ;;  %v3646_v50 = vsel %vm1819_vm8, %v3640_v26, %v1806_v41 }
 0x2e3   :  { %v3650_v57 = vsel %vm1819_vm8, %v1806_v41, %v1808_v34 }
 0x2e4   :  { %v1836_v59 = vcombine.low %v3646_v50, %v3650_v57 }
 0x2e5   :  { %v3654_v5 = vpop.permute.xlu1 %1809 }
 0x2e6   :  { %v3659_v2 = vsel %vm1819_vm8, %v1808_v34, %v3654_v5  ;;  %v3661_v10 = vpop.permute.xlu0 %1958 }
 0x2e9   :  { %v3663_v53 = vpop.permute.xlu1 %1960 }
 0x2ea   :  { %v1963_v38 = vpop.permute.xlu0 %1962 }
 0x2eb   :  { %v3669_v52 = vsel %vm1974_vm9, %v3663_v53, %v1963_v38 }
 0x2ed   :  { %v3671_v17 = vpop.permute.xlu1 %1964 }
 0x2ee   :  { %v3676_v39 = vsel %vm1974_vm9, %v1963_v38, %v3671_v17  ;;  %v3678_v60 = vpop.permute.xlu0 %2060 }
 0x2ef   :  { %v1992_v61 = vcombine.low %v3669_v52, %v3676_v39 }
 0x2f1   :  { %v3682_v18 = vpop.permute.xlu1 %2062 }
 0x2f2   :  { %v2065_v25 = vpop.permute.xlu0 %2064 }
 0x2f3   :  { %v3688_v63 = vsel %vm2076_vm10, %v3682_v18, %v2065_v25 }
 0x2f5   :  { %v3690_v8 = vpop.permute.xlu1 %2066 }
 0x2f6   :  { %v3695_v11 = vsel %vm2076_vm10, %v2065_v25, %v3690_v8  ;;  %v3697_v15 = vpop.permute.xlu0 %2162 }
 0x2f7   :  { %v2094_v43 = vcombine.low %v3688_v63, %v3695_v11 }
 0x2f9   :  { %v3701_v56 = vpop.permute.xlu1 %2164 }
 0x2fa   :  { %v2167_v27 = vpop.permute.xlu0 %2166 }
 0x2fb   :  { %v3707_v22 = vsel %vm2178_vm11, %v3701_v56, %v2167_v27 }
 0x2fd   :  { %v3709_v42 = vpop.permute.xlu1 %2168 }
 0x2fe   :  { %v3714_v28 = vsel %vm2178_vm11, %v2167_v27, %v3709_v42  ;;  %v2257_v55 = vpop.permute.xlu0 %2256 }
 0x2ff   :  { %v2196_v6 = vcombine.low %v3707_v22, %v3714_v28  ;;  %v2268_v31 = vsel %vm2264_vm4, %v3562_v3, %v2257_v55 }
 0x301   :  { %v2259_v58 = vpop.permute.xlu1 %2258 }
 0x302   :  { %v2267_v19 = vsel %vm2264_vm4, %v2257_v55, %v2259_v58  ;;  %v2261_v32 = vpop.permute.xlu0 %2260 }
 0x303   :  { %v2266_v35 = vsel %vm2264_vm4, %v2259_v58, %v2261_v32  ;;  %v2283_v47 = vcombine.low %v2268_v31, %v2267_v19 }
 0x305   :  { %v2263_v54 = vpop.permute.xlu1 %2262  ;;  %v2305_v58 = vrot.slane %v2283_v47, %v3358_v44 }
 0x306   :  { %v2265_v41 = vsel %vm2264_vm4, %v2261_v32, %v2263_v54  ;;  %v2272_v3 = vsel %vm2264_vm4, %v2263_v54, %v3542_v16  ;;  %v1497_v34 = vpop.permute.xlu0 %1496  ;;  %v1533_v32 = vrot.slane %v1523_v51, %v3358_v44 }
 0x307   :  { %v2281_v38 = vcombine.low %v2272_v3, %v2271_v24  ;;  %v2284_v25 = vcombine.low %v2266_v35, %v2265_v41  ;;  %v1510_v27 = vsel %vm1506_vm5, %v3591_v45, %v1497_v34 }
 0x308   :  { %v1524_v55 = vcombine.low %v3596_v1, %v1510_v27 }
 0x309   :  { %v2291_v31 = vrot.slane %v2281_v38, %v3358_v44  ;;  %v2312_v16 = vrot.slane %v2284_v25, %v3358_v44  ;;  %v1499_v19 = vpop.permute.xlu1 %1498 }
 0x30a   :  { %v1540_v45 = vrot.slane %v1524_v55, %v3358_v44  ;;  %v1501_v1 = vpop.permute.xlu0 %1500  ;;  %v1509_v14 = vsel %vm1506_vm5, %v1497_v34, %v1499_v19 }
 0x30b   :  { %v2313_v35 = vcombine.low %v2291_v31, %v2298_v23  ;;  %v2314_v54 = vcombine.low %v2305_v58, %v2312_v16  ;;  %v1508_v9 = vsel %vm1506_vm5, %v1499_v19, %v1501_v1 }
 0x30c   :  { %v1555_v30 = vcombine.low %v1533_v32, %v1540_v45  ;;  %v1525_v47 = vcombine.low %v1509_v14, %v1508_v9 }
 0x30d   :  { %v2321_v24 = vrot.slane %v2313_v35, %v3358_v44  ;;  %v2328_v41 = vrot.slane %v2314_v54, %v3358_v44  ;;  %v1503_v3 = vpop.permute.xlu1 %1502 }
 0x30e   :  { %v1507_v33 = vsel %vm1506_vm5, %v1501_v1, %v1503_v3  ;;  %v1514_v62 = vsel %vm1506_vm5, %v1503_v3, %v3570_v29  ;;  %v1608_v51 = vpop.permute.xlu0 %1607  ;;  %v1547_v34 = vrot.slane %v1525_v47, %v3358_v44  ;;  %v1642_v29 = vrot.slane %v1632_v40, %v3358_v44 }
 0x30f   :  { %v2329_v38 = vcombine.low %v2321_v24, %v2328_v41  ;;  %v1526_v25 = vcombine.low %v1507_v33, %v1514_v62  ;;  %v1619_v27 = vsel %vm1615_vm6, %v3612_v0, %v1608_v51  ;;  %v1563_v1 = vrot.slane %v1555_v30, %v3358_v44 }
 0x310   :  { %v1633_v55 = vcombine.low %v3617_v12, %v1619_v27 }
 0x311   :  { %2332 = vst [vmem:[#allocation2 + $0x40] ss:$8 sm:$0xf] %v2329_v38  ;;  %2333 = vst [vmem:[#allocation2 + $0x40] ss:$8 sm:$0xf0] %v2329_v38  ;;  %v1554_v23 = vrot.slane %v1526_v25, %v3358_v44  ;;  %v1610_v58 = vpop.permute.xlu1 %1609 }
 0x312   :  { %v1649_v31 = vrot.slane %v1633_v55, %v3358_v44  ;;  %v1612_v16 = vpop.permute.xlu0 %1611  ;;  %v1618_v32 = vsel %vm1615_vm6, %v1608_v51, %v1610_v58 }
 0x313   :  { %v1556_v19 = vcombine.low %v1547_v34, %v1554_v23  ;;  %v1617_v0 = vsel %vm1615_vm6, %v1610_v58, %v1612_v16 }
 0x314   :  { %v1664_v12 = vcombine.low %v1642_v29, %v1649_v31  ;;  %v1634_v45 = vcombine.low %v1618_v32, %v1617_v0 }
 0x315   :  { %v1570_v35 = vrot.slane %v1556_v19, %v3358_v44  ;;  %v1614_v54 = vpop.permute.xlu1 %1613 }
 0x316   :  { %v1616_v48 = vsel %vm1615_vm6, %v1612_v16, %v1614_v54  ;;  %v1623_v36 = vsel %vm1615_vm6, %v1614_v54, %v3598_v46  ;;  %v1710_v40 = vpop.permute.xlu0 %1709  ;;  %v1656_v9 = vrot.slane %v1634_v45, %v3358_v44  ;;  %v1744_v46 = vrot.slane %v1734_v4, %v3358_v44 }
 0x317   :  { %v1571_v14 = vcombine.low %v1563_v1, %v1570_v35  ;;  %v1635_v47 = vcombine.low %v1616_v48, %v1623_v36  ;;  %v1721_v24 = vsel %vm1717_vm7, %v3633_v20, %v1710_v40  ;;  %v1672_v25 = vrot.slane %v1664_v12, %v3358_v44 }
 0x318   :  { %v1735_v30 = vcombine.low %v3638_v49, %v1721_v24  ;;  %v3908_v22 = vld [vmem:[#allocation2 + $0x48] sm:$0x1]  ;;  %v3910_v28 = vld [vmem:[#allocation2 + $0x50] sm:$0x1] }
 0x319   :  { %1573 = vst [vmem:[#allocation2] ss:$8 sm:$0xf] %v1571_v14  ;;  %1574 = vst [vmem:[#allocation2] ss:$8 sm:$0xf0] %v1571_v14  ;;  %v1663_v41 = vrot.slane %v1635_v47, %v3358_v44  ;;  %v1712_v3 = vpop.permute.xlu1 %1711 }
 0x31a   :  { %v1751_v33 = vrot.slane %v1735_v30, %v3358_v44  ;;  %v1714_v62 = vpop.permute.xlu0 %1713  ;;  %v1720_v38 = vsel %vm1717_vm7, %v1710_v40, %v1712_v3 }
 0x31b   :  { %v1665_v51 = vcombine.low %v1656_v9, %v1663_v41  ;;  %v1719_v20 = vsel %vm1717_vm7, %v1712_v3, %v1714_v62 }
 0x31c   :  { %v1766_v49 = vcombine.low %v1744_v46, %v1751_v33  ;;  %v1736_v34 = vcombine.low %v1720_v38, %v1719_v20  ;;  %v1981_v20 = vsel %vm1974_vm9, %v3661_v10, %v3663_v53 }
 0x31d   :  { %v1679_v27 = vrot.slane %v1665_v51, %v3358_v44  ;;  %v1716_v55 = vpop.permute.xlu1 %1715 }
 0x31e   :  { %v1718_v37 = vsel %vm1717_vm7, %v1714_v62, %v1716_v55  ;;  %v1725_v7 = vsel %vm1717_vm7, %v1716_v55, %v3619_v13  ;;  %v1812_v4 = vpop.permute.xlu0 %1811  ;;  %v1758_v58 = vrot.slane %v1736_v34, %v3358_v44  ;;  %v1846_v13 = vrot.slane %v1836_v59, %v3358_v44 }
 0x31f   :  { %v1680_v23 = vcombine.low %v1672_v25, %v1679_v27  ;;  %v1737_v29 = vcombine.low %v1718_v37, %v1725_v7  ;;  %v1823_v31 = vsel %vm1819_vm8, %v3654_v5, %v1812_v4  ;;  %v1774_v54 = vrot.slane %v1766_v49, %v3358_v44 }
 0x320   :  { %v1837_v16 = vcombine.low %v3659_v2, %v1823_v31  ;;  %v2008_v37 = vrot.slane %v1992_v61, %v3358_v44 }
 0x321   :  { %1683 = vst [vmem:[#allocation2 + $0x1] ss:$8 sm:$0xf] %v1680_v23  ;;  %1684 = vst [vmem:[#allocation2 + $0x1] ss:$8 sm:$0xf0] %v1680_v23  ;;  %v1765_v19 = vrot.slane %v1737_v29, %v3358_v44  ;;  %v1814_v32 = vpop.permute.xlu1 %1813 }
 0x322   :  { %v1853_v0 = vrot.slane %v1837_v16, %v3358_v44  ;;  %v1816_v12 = vpop.permute.xlu0 %1815  ;;  %v1822_v1 = vsel %vm1819_vm8, %v1812_v4, %v1814_v32 }
 0x323   :  { %v1767_v45 = vcombine.low %v1758_v58, %v1765_v19  ;;  %v1821_v5 = vsel %vm1819_vm8, %v1814_v32, %v1816_v12 }
 0x324   :  { %v1868_v2 = vcombine.low %v1846_v13, %v1853_v0  ;;  %v1838_v35 = vcombine.low %v1822_v1, %v1821_v5 }
 0x325   :  { %v1781_v48 = vrot.slane %v1767_v45, %v3358_v44  ;;  %v1818_v36 = vpop.permute.xlu1 %1817 }
 0x326   :  { %v1820_v50 = vsel %vm1819_vm8, %v1816_v12, %v1818_v36  ;;  %v1827_v57 = vsel %vm1819_vm8, %v1818_v36, %v3640_v26  ;;  %v1967_v59 = vpop.permute.xlu0 %1966  ;;  %v1860_v14 = vrot.slane %v1838_v35, %v3358_v44  ;;  %v1876_v33 = vrot.slane %v1868_v2, %v3358_v44 }
 0x327   :  { %v1782_v40 = vcombine.low %v1774_v54, %v1781_v48  ;;  %v1839_v9 = vcombine.low %v1820_v50, %v1827_v57  ;;  %v1978_v30 = vsel %vm1974_vm9, %v3671_v17, %v1967_v59  ;;  %v2110_v2 = vrot.slane %v2094_v43, %v3358_v44 }
 0x329   :  { %1785 = vst [vmem:[#allocation2 + $0x2] ss:$8 sm:$0xf] %v1782_v40  ;;  %1786 = vst [vmem:[#allocation2 + $0x2] ss:$8 sm:$0xf0] %v1782_v40  ;;  %v1867_v47 = vrot.slane %v1839_v9, %v3358_v44  ;;  %v1969_v24 = vpop.permute.xlu1 %1968 }
 0x32a   :  { %v1977_v41 = vsel %vm1974_vm9, %v1967_v59, %v1969_v24  ;;  %v1971_v3 = vpop.permute.xlu0 %1970 }
 0x32b   :  { %v1869_v46 = vcombine.low %v1860_v14, %v1867_v47  ;;  %v1976_v26 = vsel %vm1974_vm9, %v1969_v24, %v1971_v3  ;;  %v1993_v51 = vcombine.low %v1978_v30, %v1977_v41 }
 0x32d   :  { %v1883_v62 = vrot.slane %v1869_v46, %v3358_v44  ;;  %v1973_v38 = vpop.permute.xlu1 %1972  ;;  %v2015_v53 = vrot.slane %v1993_v51, %v3358_v44 }
 0x32e   :  { %v1975_v17 = vsel %vm1974_vm9, %v1971_v3, %v1973_v38  ;;  %v1982_v49 = vsel %vm1974_vm9, %v1973_v38, %v3661_v10  ;;  %v2069_v34 = vpop.permute.xlu0 %2068  ;;  %v2212_v3 = vrot.slane %v2196_v6, %v3358_v44  ;;  %v3906_v38 = vld [vmem:[#allocation2 + $0x40] sm:$0x1]  ;;  %v3912_v6 = vld [vmem:[#allocation2 + $0x58] sm:$0x1] }
 0x32f   :  { %v1884_v25 = vcombine.low %v1876_v33, %v1883_v62  ;;  %v1991_v27 = vcombine.low %v1982_v49, %v1981_v20  ;;  %v1994_v55 = vcombine.low %v1976_v26, %v1975_v17  ;;  %v2080_v10 = vsel %vm2076_vm10, %v3690_v8, %v2069_v34  ;;  %v3914_v20 = vld [vmem:[#allocation2 + $0x60] sm:$0x1]  ;;  %v3916_v17 = vld [vmem:[#allocation2 + $0x68] sm:$0x1]  ;;  %v3918_v49 = vld [vmem:[#allocation2 + $0x70] sm:$0x1] }
 0x330   :  { %v2083_v8 = vsel %vm2076_vm10, %v3678_v60, %v3682_v18 }
 0x331   :  { %1887 = vst [vmem:[#allocation2 + $0x3] ss:$8 sm:$0xf] %v1884_v25  ;;  %1888 = vst [vmem:[#allocation2 + $0x3] ss:$8 sm:$0xf0] %v1884_v25  ;;  %v2001_v7 = vrot.slane %v1991_v27, %v3358_v44  ;;  %v2022_v4 = vrot.slane %v1994_v55, %v3358_v44  ;;  %v2071_v23 = vpop.permute.xlu1 %2070 }
 0x332   :  { %v2079_v58 = vsel %vm2076_vm10, %v2069_v34, %v2071_v23  ;;  %v2073_v29 = vpop.permute.xlu0 %2072  ;;  %v3920_v34 = vld [vmem:[#allocation2 + $0x78] sm:$0x1]  ;;  %v2350_v25 = vsel %vm1181_vm3, %v3906_v38, -inf  ;;  %v2358_v27 = vsel %vm1181_vm3, %v3908_v22, -inf  ;;  %v2366_v55 = vsel %vm1181_vm3, %v3910_v28, -inf }
 0x333   :  { %v2023_v31 = vcombine.low %v2001_v7, %v2008_v37  ;;  %v2024_v52 = vcombine.low %v2015_v53, %v2022_v4  ;;  %v2078_v39 = vsel %vm2076_vm10, %v2071_v23, %v2073_v29  ;;  %v2095_v19 = vcombine.low %v2080_v10, %v2079_v58 }
 0x334   :  { %v2374_v4 = vsel %vm1181_vm3, %v3912_v6, -inf  ;;  %v2382_v23 = vsel %vm1181_vm3, %v3914_v20, -inf  ;;  %v2390_v10 = vsel %vm1181_vm3, %v3916_v17, -inf }
 0x335   :  { %v2031_v61 = vrot.slane %v2023_v31, %v3358_v44  ;;  %v2038_v16 = vrot.slane %v2024_v52, %v3358_v44  ;;  %v2075_v32 = vpop.permute.xlu1 %2074  ;;  %v2117_v18 = vrot.slane %v2095_v19, %v3358_v44 }
 0x336   :  { %v2077_v13 = vsel %vm2076_vm10, %v2073_v29, %v2075_v32  ;;  %v2084_v0 = vsel %vm2076_vm10, %v2075_v32, %v3678_v60  ;;  %v2171_v12 = vpop.permute.xlu0 %2170 }
 0x337   :  { %v2039_v45 = vcombine.low %v2031_v61, %v2038_v16  ;;  %v2093_v1 = vcombine.low %v2084_v0, %v2083_v8  ;;  %v2096_v5 = vcombine.low %v2078_v39, %v2077_v13  ;;  %v2182_v60 = vsel %vm2178_vm11, %v3709_v42, %v2171_v12 }
 0x338   :  { %v2185_v42 = vsel %vm2178_vm11, %v3697_v15, %v3701_v56  ;;  %v2398_v16 = vsel %vm1181_vm3, %v3918_v49, -inf }
 0x339   :  { %2042 = vst [vmem:[#allocation2 + $0x5] ss:$8 sm:$0xf] %v2039_v45  ;;  %2043 = vst [vmem:[#allocation2 + $0x5] ss:$8 sm:$0xf0] %v2039_v45  ;;  %v2103_v35 = vrot.slane %v2093_v1, %v3358_v44  ;;  %v2124_v54 = vrot.slane %v2096_v5, %v3358_v44  ;;  %v2173_v48 = vpop.permute.xlu1 %2172 }
 0x33a   :  { %v2181_v36 = vsel %vm2178_vm11, %v2171_v12, %v2173_v48  ;;  %v2175_v50 = vpop.permute.xlu0 %2174  ;;  %v2406_v12 = vsel %vm1181_vm3, %v3920_v34, -inf }
 0x33b   :  { %v2125_v57 = vcombine.low %v2103_v35, %v2110_v2  ;;  %v2126_v63 = vcombine.low %v2117_v18, %v2124_v54  ;;  %v2180_v11 = vsel %vm2178_vm11, %v2173_v48, %v2175_v50  ;;  %v2197_v40 = vcombine.low %v2182_v60, %v2181_v36 }
 0x33d   :  { %v2133_v43 = vrot.slane %v2125_v57, %v3358_v44  ;;  %v2140_v59 = vrot.slane %v2126_v63, %v3358_v44  ;;  %v2177_v14 = vpop.permute.xlu1 %2176  ;;  %v2219_v46 = vrot.slane %v2197_v40, %v3358_v44 }
 0x33e   :  { %v2179_v9 = vsel %vm2178_vm11, %v2175_v50, %v2177_v14  ;;  %v2186_v47 = vsel %vm2178_vm11, %v2177_v14, %v3697_v15 }
 0x33f   :  { %v2141_v24 = vcombine.low %v2133_v43, %v2140_v59  ;;  %v2195_v30 = vcombine.low %v2186_v47, %v2185_v42  ;;  %v2198_v41 = vcombine.low %v2180_v11, %v2179_v9 }
 0x341   :  { %2144 = vst [vmem:[#allocation2 + $0x6] ss:$8 sm:$0xf] %v2141_v24  ;;  %2145 = vst [vmem:[#allocation2 + $0x6] ss:$8 sm:$0xf0] %v2141_v24  ;;  %v2205_v56 = vrot.slane %v2195_v30, %v3358_v44  ;;  %v2226_v26 = vrot.slane %v2198_v41, %v3358_v44 }
 0x343   :  { %v2227_v33 = vcombine.low %v2205_v56, %v2212_v3  ;;  %v2228_v62 = vcombine.low %v2219_v46, %v2226_v26 }
 0x345   :  { %v2235_v21 = vrot.slane %v2227_v33, %v3358_v44  ;;  %v2242_v15 = vrot.slane %v2228_v62, %v3358_v44 }
 0x347   :  { %v2243_v51 = vcombine.low %v2235_v21, %v2242_v15 }
 0x349   :  { %2246 = vst [vmem:[#allocation2 + $0x7] ss:$8 sm:$0xf] %v2243_v51  ;;  %2247 = vst [vmem:[#allocation2 + $0x7] ss:$8 sm:$0xf0] %v2243_v51 }
 0x350   :  { %v3928_v37 = vld [vmem:[#allocation2] sm:$0xff]  ;;  %v3930_v53 = vld [vmem:[#allocation2 + $0x8] sm:$0xff]  ;;  %v3932_v7 = vld [vmem:[#allocation2 + $0x10] sm:$0xff] }
 0x351   :  { %v3940_v58 = vld [vmem:[#allocation2 + $0x18] sm:$0xff]  ;;  %v3942_v29 = vld [vmem:[#allocation2 + $0x20] sm:$0xff]  ;;  %v3944_v31 = vld [vmem:[#allocation2 + $0x28] sm:$0xff]  ;;  %v2351_v52 = vmax.f32 %v3928_v37, %v2350_v25  ;;  %v2359_v39 = vmax.f32 %v3930_v53, %v2358_v27  ;;  %v2367_v61 = vmax.f32 %v3932_v7, %v2366_v55 }
 0x352   :  { %v3951_v19 = vld [vmem:[#allocation2 + $0x30] sm:$0xff]  ;;  %v3953_v32 = vld [vmem:[#allocation2 + $0x38] sm:$0xff]  ;;  %v2375_v8 = vmax.f32 %v3940_v58, %v2374_v4  ;;  %v2383_v13 = vmax.f32 %v3942_v29, %v2382_v23  ;;  %v2391_v0 = vmax.f32 %v3944_v31, %v2390_v10 }
 0x353   :  { %v2352_v45 = vrot.slane %v2351_v52, 4  ;;  %v2360_v1 = vrot.slane %v2359_v39, 4  ;;  %v2368_v5 = vrot.slane %v2367_v61, 4  ;;  %v2399_v2 = vmax.f32 %v3951_v19, %v2398_v16 }
 0x354   :  { %v2376_v18 = vrot.slane %v2375_v8, 4  ;;  %v2384_v35 = vrot.slane %v2383_v13, 4  ;;  %v2392_v54 = vrot.slane %v2391_v0, 4  ;;  %v2407_v48 = vmax.f32 %v3953_v32, %v2406_v12 }
 0x355   :  { %v2353_v60 = vmax.f32 %v2351_v52, %v2352_v45  ;;  %v2361_v36 = vmax.f32 %v2359_v39, %v2360_v1  ;;  %v2369_v50 = vmax.f32 %v2367_v61, %v2368_v5  ;;  %v2400_v57 = vrot.slane %v2399_v2, 4 }
 0x356   :  { %v2377_v63 = vmax.f32 %v2375_v8, %v2376_v18  ;;  %v2385_v11 = vmax.f32 %v2383_v13, %v2384_v35  ;;  %v2393_v43 = vmax.f32 %v2391_v0, %v2392_v54  ;;  %v2408_v59 = vrot.slane %v2407_v48, 4 }
 0x357   :  { %v2354_v40 = vrot.slane %v2353_v60, 2  ;;  %v2362_v14 = vrot.slane %v2361_v36, 2  ;;  %v2370_v42 = vrot.slane %v2369_v50, 2  ;;  %v2401_v9 = vmax.f32 %v2399_v2, %v2400_v57 }
 0x358   :  { %v2378_v47 = vrot.slane %v2377_v63, 2  ;;  %v2386_v24 = vrot.slane %v2385_v11, 2  ;;  %v2394_v30 = vrot.slane %v2393_v43, 2  ;;  %v2409_v41 = vmax.f32 %v2407_v48, %v2408_v59 }
 0x359   :  { %v2355_v3 = vmax.f32 %v2353_v60, %v2354_v40  ;;  %v2363_v46 = vmax.f32 %v2361_v36, %v2362_v14  ;;  %v2371_v56 = vmax.f32 %v2369_v50, %v2370_v42  ;;  %v2402_v26 = vrot.slane %v2401_v9, 2 }
 0x35a   :  { %v2379_v33 = vmax.f32 %v2377_v63, %v2378_v47  ;;  %v2387_v62 = vmax.f32 %v2385_v11, %v2386_v24  ;;  %v2395_v21 = vmax.f32 %v2393_v43, %v2394_v30  ;;  %v2410_v10 = vrot.slane %v2409_v41, 2 }
 0x35b   :  { %v2356_v15 = vrot.slane %v2355_v3, 1  ;;  %v2364_v51 = vrot.slane %v2363_v46, 1  ;;  %v2372_v25 = vrot.slane %v2371_v56, 1  ;;  %v2403_v27 = vmax.f32 %v2401_v9, %v2402_v26 }
 0x35c   :  { %v2380_v55 = vrot.slane %v2379_v33, 1  ;;  %v2388_v4 = vrot.slane %v2387_v62, 1  ;;  %v2396_v23 = vrot.slane %v2395_v21, 1  ;;  %v2411_v5 = vmax.f32 %v2409_v41, %v2410_v10 }
 0x35d   :  { %v3962_v52 = vmax.f32 %v2355_v3, %v2356_v15  ;;  %v3964_v39 = vmax.f32 %v2363_v46, %v2364_v51  ;;  %v3966_v61 = vmax.f32 %v2371_v56, %v2372_v25  ;;  %v2404_v16 = vrot.slane %v2403_v27, 1 }
 0x35e   :  { %v3968_v8 = vmax.f32 %v2379_v33, %v2380_v55  ;;  %v3970_v13 = vmax.f32 %v2387_v62, %v2388_v4  ;;  %v3972_v0 = vmax.f32 %v2395_v21, %v2396_v23  ;;  %v2412_v60 = vrot.slane %v2411_v5, 1 }
 0x35f   :  { %v2414_v12 = vsub.f32 %v3928_v37, %v3962_v52  ;;  %v2415_v45 = vsub.f32 %v3930_v53, %v3964_v39  ;;  %v3978_v1 = vmax.f32 %v2403_v27, %v2404_v16  ;;  %v2416_v2 = vsub.f32 %v3932_v7, %v3966_v61 }
 0x360   :  { %v2417_v18 = vsub.f32 %v3940_v58, %v3968_v8  ;;  %v2418_v35 = vsub.f32 %v3942_v29, %v3970_v13  ;;  %v2419_v54 = vsub.f32 %v3944_v31, %v3972_v0  ;;  %v2422_v50 = vsub.f32 %v3906_v38, %v3962_v52 }
 0x361   :  { %v2430_v48 = vmul.f32 1.442695, %v2414_v12  ;;  %v2432_v37 = vmul.f32 1.442695, %v2415_v45  ;;  %v2420_v53 = vsub.f32 %v3951_v19, %v3978_v1  ;;  %v2434_v36 = vmul.f32 1.442695, %v2416_v2 }
 0x362   :  { %v2436_v7 = vmul.f32 1.442695, %v2417_v18  ;;  %v2423_v58 = vsub.f32 %v3908_v22, %v3964_v39  ;;  %v2438_v57 = vmul.f32 1.442695, %v2418_v35  ;;  %v2424_v29 = vsub.f32 %v3910_v28, %v3966_v61 }
 0x363   :  { %2791 = vpow2.f32 %v2430_v48  ;;  %v2440_v31 = vmul.f32 1.442695, %v2419_v54  ;;  %v3996_v63 = vmax.f32 %v2411_v5, %v2412_v60  ;;  %v2425_v19 = vsub.f32 %v3912_v6, %v3968_v8 }
 0x364   :  { %2793 = vpow2.f32 %v2432_v37  ;;  %v2442_v11 = vmul.f32 1.442695, %v2420_v53  ;;  %v2426_v38 = vsub.f32 %v3914_v20, %v3970_v13  ;;  %v2446_v43 = vmul.f32 1.442695, %v2422_v50 }
 0x365   :  { %2795 = vpow2.f32 %v2434_v36  ;;  %v2427_v22 = vsub.f32 %v3916_v17, %v3972_v0  ;;  %v2448_v59 = vmul.f32 1.442695, %v2423_v58  ;;  %v2428_v28 = vsub.f32 %v3918_v49, %v3978_v1 }
 0x366   :  { %2797 = vpow2.f32 %v2436_v7  ;;  %v2450_v40 = vmul.f32 1.442695, %v2424_v29  ;;  %v2429_v6 = vsub.f32 %v3920_v34, %v3996_v63  ;;  %v2452_v14 = vmul.f32 1.442695, %v2425_v19 }
 0x367   :  { %2799 = vpow2.f32 %v2438_v57  ;;  %v2421_v20 = vsub.f32 %v3953_v32, %v3996_v63  ;;  %v2454_v42 = vmul.f32 1.442695, %v2426_v38  ;;  %v2456_v9 = vmul.f32 1.442695, %v2427_v22 }
 0x368   :  { %2801 = vpow2.f32 %v2440_v31  ;;  %v2458_v17 = vmul.f32 1.442695, %v2428_v28  ;;  %v2460_v24 = vmul.f32 1.442695, %v2429_v6 }
 0x369   :  { %2803 = vpow2.f32 %v2442_v11  ;;  %v2444_v30 = vmul.f32 1.442695, %v2421_v20 }
 0x36a   :  { %2805 = vpow2.f32 %v2446_v43 }
 0x36b   :  { %2807 = vpow2.f32 %v2448_v59 }
 0x36c   :  { %2809 = vpow2.f32 %v2450_v40 }
 0x36d   :  { %v2792_v47 = vpop.eup %2791  ;;  %2811 = vpow2.f32 %v2452_v14 }
 0x36e   :  { %v2794_v49 = vpop.eup %2793  ;;  %2813 = vpow2.f32 %v2454_v42 }
 0x36f   :  { %v2796_v41 = vpop.eup %2795  ;;  %2815 = vpow2.f32 %v2456_v9 }
 0x370   :  { %v2798_v34 = vpop.eup %2797  ;;  %2817 = vpow2.f32 %v2458_v17 }
 0x371   :  { %v2800_v3 = vpop.eup %2799  ;;  %2819 = vpow2.f32 %v2460_v24 }
 0x372   :  { %v2802_v46 = vpop.eup %2801  ;;  %2821 = vpow2.f32 %v2444_v30 }
 0x373   :  { %v2804_v32 = vpop.eup %2803 }
 0x374   :  { %v2806_v56 = vpop.eup %2805 }
 0x375   :  { %v2808_v26 = vpop.eup %2807  ;;  %v2462_v33 = vsel %vm1181_vm3, %v2806_v56, 0.0 }
 0x376   :  { %v2810_v62 = vpop.eup %2809  ;;  %v2463_v21 = vadd.f32 %v2792_v47, %v2462_v33  ;;  %v2470_v15 = vsel %vm1181_vm3, %v2808_v26, 0.0 }
 0x377   :  { %v2812_v51 = vpop.eup %2811  ;;  %v2471_v25 = vadd.f32 %v2794_v49, %v2470_v15  ;;  %v2478_v27 = vsel %vm1181_vm3, %v2810_v62, 0.0 }
 0x378   :  { %v2814_v55 = vpop.eup %2813  ;;  %v2464_v4 = vrot.slane %v2463_v21, 4  ;;  %v2479_v23 = vadd.f32 %v2796_v41, %v2478_v27  ;;  %v2486_v10 = vsel %vm1181_vm3, %v2812_v51, 0.0 }
 0x379   :  { %v2816_v16 = vpop.eup %2815  ;;  %v2472_v12 = vrot.slane %v2471_v25, 4  ;;  %v2487_v45 = vadd.f32 %v2798_v34, %v2486_v10  ;;  %v2494_v5 = vsel %vm1181_vm3, %v2814_v55, 0.0 }
 0x37a   :  { %v2818_v2 = vpop.eup %2817  ;;  %v2465_v18 = vadd.f32 %v2464_v4, %v2463_v21  ;;  %v2480_v35 = vrot.slane %v2479_v23, 4  ;;  %v2495_v54 = vadd.f32 %v2800_v3, %v2494_v5  ;;  %v2502_v48 = vsel %vm1181_vm3, %v2816_v16, 0.0 }
 0x37b   :  { %v2820_v37 = vpop.eup %2819  ;;  %v2473_v60 = vadd.f32 %v2472_v12, %v2471_v25  ;;  %v2488_v53 = vrot.slane %v2487_v45, 4  ;;  %v2503_v36 = vadd.f32 %v2802_v46, %v2502_v48  ;;  %v2510_v50 = vsel %vm1181_vm3, %v2818_v2, 0.0 }
 0x37c   :  { %v2822_v7 = vpop.eup %2821  ;;  %v2466_v58 = vrot.slane %v2465_v18, 2  ;;  %v2481_v57 = vadd.f32 %v2480_v35, %v2479_v23  ;;  %v2496_v29 = vrot.slane %v2495_v54, 4  ;;  %v2511_v31 = vadd.f32 %v2804_v32, %v2510_v50 }
 0x37d   :  { %v2474_v19 = vrot.slane %v2473_v60, 2  ;;  %v2489_v11 = vadd.f32 %v2488_v53, %v2487_v45  ;;  %v2504_v38 = vrot.slane %v2503_v36, 4  ;;  %v2518_v43 = vsel %vm1181_vm3, %v2820_v37, 0.0 }
 0x37e   :  { %v2467_v22 = vadd.f32 %v2466_v58, %v2465_v18  ;;  %v2482_v59 = vrot.slane %v2481_v57, 2  ;;  %v2497_v28 = vadd.f32 %v2496_v29, %v2495_v54  ;;  %v2512_v40 = vrot.slane %v2511_v31, 4 }
 0x37f   :  { %v2475_v6 = vadd.f32 %v2474_v19, %v2473_v60  ;;  %v2490_v14 = vrot.slane %v2489_v11, 2  ;;  %v2505_v20 = vadd.f32 %v2504_v38, %v2503_v36  ;;  %v2519_v42 = vadd.f32 %v2822_v7, %v2518_v43 }
 0x380   :  { %v2468_v9 = vrot.slane %v2467_v22, 1  ;;  %v2483_v17 = vadd.f32 %v2482_v59, %v2481_v57  ;;  %v2498_v47 = vrot.slane %v2497_v28, 2  ;;  %v2513_v24 = vadd.f32 %v2512_v40, %v2511_v31 }
 0x381   :  { %v2476_v49 = vrot.slane %v2475_v6, 1  ;;  %v2491_v30 = vadd.f32 %v2490_v14, %v2489_v11  ;;  %v2506_v41 = vrot.slane %v2505_v20, 2  ;;  %v2520_v34 = vrot.slane %v2519_v42, 4 }
 0x382   :  { %v2469_v3 = vadd.f32 %v2468_v9, %v2467_v22  ;;  %v2484_v46 = vrot.slane %v2483_v17, 1  ;;  %v2499_v32 = vadd.f32 %v2498_v47, %v2497_v28  ;;  %v2514_v56 = vrot.slane %v2513_v24, 2 }
 0x383   :  { %v2477_v26 = vadd.f32 %v2476_v49, %v2475_v6  ;;  %v2492_v33 = vrot.slane %v2491_v30, 1  ;;  %v2507_v62 = vadd.f32 %v2506_v41, %v2505_v20  ;;  %v2521_v21 = vadd.f32 %v2520_v34, %v2519_v42 }
 0x384   :  { %v2485_v15 = vadd.f32 %v2484_v46, %v2483_v17  ;;  %v2500_v51 = vrot.slane %v2499_v32, 1  ;;  %v2515_v25 = vadd.f32 %v2514_v56, %v2513_v24  ;;  %2823 = vlog2.f32 %v2469_v3 }
 0x385   :  { %v2493_v27 = vadd.f32 %v2492_v33, %v2491_v30  ;;  %v2508_v55 = vrot.slane %v2507_v62, 1  ;;  %v2522_v4 = vrot.slane %v2521_v21, 2  ;;  %2825 = vlog2.f32 %v2477_v26 }
 0x386   :  { %v2501_v23 = vadd.f32 %v2500_v51, %v2499_v32  ;;  %v2516_v10 = vrot.slane %v2515_v25, 1  ;;  %2827 = vlog2.f32 %v2485_v15 }
 0x387   :  { %v2509_v16 = vadd.f32 %v2508_v55, %v2507_v62  ;;  %v2523_v12 = vadd.f32 %v2522_v4, %v2521_v21  ;;  %2829 = vlog2.f32 %v2493_v27 }
 0x388   :  { %v2517_v45 = vadd.f32 %v2516_v10, %v2515_v25  ;;  %2831 = vlog2.f32 %v2501_v23 }
 0x389   :  { %v2524_v5 = vrot.slane %v2523_v12, 1  ;;  %2833 = vlog2.f32 %v2509_v16 }
 0x38a   :  { %2835 = vlog2.f32 %v2517_v45 }
 0x38b   :  { %v2525_v2 = vadd.f32 %v2524_v5, %v2523_v12 }
 0x38d   :  { %2837 = vlog2.f32 %v2525_v2 }
 0x38e   :  { %v2824_v18 = vpop.eup %2823 }
 0x38f   :  { %v2826_v35 = vpop.eup %2825  ;;  %v2527_v54 = vmul.f32 0.6931472, %v2824_v18 }
 0x390   :  { %v2828_v48 = vpop.eup %2827  ;;  %v2529_v37 = vmul.f32 0.6931472, %v2826_v35 }
 0x391   :  { %v2830_v60 = vpop.eup %2829  ;;  %v2531_v53 = vmul.f32 0.6931472, %v2828_v48  ;;  %v2542_v36 = vadd.f32 %v2527_v54, %v3962_v52 }
 0x392   :  { %v2832_v50 = vpop.eup %2831  ;;  %v2533_v7 = vmul.f32 0.6931472, %v2830_v60  ;;  %v2543_v58 = vadd.f32 %v2529_v37, %v3964_v39 }
 0x393   :  { %v2834_v57 = vpop.eup %2833  ;;  %v2535_v29 = vmul.f32 0.6931472, %v2832_v50  ;;  %v2544_v31 = vadd.f32 %v2531_v53, %v3966_v61 }
 0x394   :  { %v2836_v19 = vpop.eup %2835  ;;  %v2537_v11 = vmul.f32 0.6931472, %v2834_v57  ;;  %v2545_v38 = vadd.f32 %v2533_v7, %v3968_v8  ;;  %v2558_v43 = vcombine.low %v2542_v36, %v2543_v58 }
 0x395   :  { %v2539_v22 = vmul.f32 0.6931472, %v2836_v19  ;;  %v2546_v59 = vadd.f32 %v2535_v29, %v3970_v13 }
 0x396   :  { %v2547_v28 = vadd.f32 %v2537_v11, %v3972_v0  ;;  %v2559_v40 = vcombine.low %v2544_v31, %v2545_v38  ;;  %v2568_v6 = vrot.slane %v2558_v43, %v3358_v44 }
 0x397   :  { %v2838_v52 = vpop.eup %2837  ;;  %v2548_v39 = vadd.f32 %v2539_v22, %v3978_v1 }
 0x398   :  { %v2541_v14 = vmul.f32 0.6931472, %v2838_v52  ;;  %v2560_v20 = vcombine.low %v2546_v59, %v2547_v28  ;;  %v2575_v61 = vrot.slane %v2559_v40, %v3358_v44 }
 0x39a   :  { %v2549_v42 = vadd.f32 %v2541_v14, %v3996_v63  ;;  %v2582_v8 = vrot.slane %v2560_v20, %v3358_v44  ;;  %v2590_v17 = vcombine.low %v2568_v6, %v2575_v61 }
 0x39c   :  { %v2561_v9 = vcombine.low %v2548_v39, %v2549_v42  ;;  %v2598_v0 = vrot.slane %v2590_v17, %v3358_v44 }
 0x39e   :  { %v2589_v13 = vrot.slane %v2561_v9, %v3358_v44 }
 0x3a0   :  { %v2591_v47 = vcombine.low %v2582_v8, %v2589_v13 }
 0x3a2   :  { %v2605_v24 = vrot.slane %v2591_v47, %v3358_v44 }
 0x3a4   :  { %v2606_v49 = vcombine.low %v2598_v0, %v2605_v24 }
 0x3a6   :  { %2608 = vst [vmem:[#allocation8] sm:$0xff] %v2606_v49 }
 0x3a7   :  { %2894 = shalt.err (!%p2891_p6)
}
 0x3a8   :  { %s2895_s23 = scalar_lea.hbm %s4052_s8, 128 }
 0x3a9   :  { %p2896_p7 = scmp.ne.s32.totalorder %s4052_s8, %s2895_s23  ;;  %p2899_p8 = scmp.lt.u32.totalorder %s2895_s23, %s4052_s8 }
 0x3ab   :  { %p2901_p9 = pnand %p2899_p8, %p2896_p7 }
 0x3ad   :  { %2904 = shalt.err (!%p2901_p9)
}
 0x3ae   :  { %2618 = dma.vmem_to_hbm [thread:$0]  %s2616_s19, 128, %s4052_s8, [#allocation5]  }
 0x3af   :  { %2909 = dma.done.wait [#allocation5], 128  }
 0x3b0   :  { %2910 = vsyncadd [#allocation5], 4294967168 }
 0x3b1   :  { %2622 = vsyncpa [#allocation4], 1 }
 0x3b2   :  { %2623 = vsyncpa [#allocation7], 1 }
 0x3b3   :  { %2624 = vsyncpa [#allocation5], 1 }

</bundles_post_ra>
